<compile_context>
chip_gen: v7x
topology: tpu7x:2x2x1
jax: 0.10.0
libtpu: 0.0.40
codegen_flags: <defaults>
</compile_context>

<pallas_src>
import jax
import jax.numpy as jnp
from jax import lax
from jax.experimental import pallas as pl
from jax.experimental.pallas import tpu as pltpu


def _round_up(x, m):
    return (x + m - 1) // m * m


def _pick_th(H, W, tc):
    """Largest TH dividing H with (TH*W) % 8 == 0 and a <=~1MiB f32 accumulator."""
    budget_rows = max(8, (1 << 20) // (tc * 4))
    for cand in range(H, 0, -1):
        if H % cand:
            continue
        rows = cand * W
        if rows % 8 != 0 and cand != H:
            continue
        if rows <= budget_rows:
            return cand
    return H


def _conv_stats_kernel(xp_ref, w_ref, y_ref, sum_ref, sq_ref, acc_ref):
    """3x3 conv (9 bf16 MXU matmuls, f32 accumulation in VMEM scratch) plus
    per-channel sum / sum-of-squares accumulation for BatchNorm batch stats.

    xp_ref : (1, H+2, W+2, Cin_p)  padded bf16 input for batch n (full image)
    w_ref  : (9, Cin_p, TC)        bf16 conv weight, tap-major, Cout tile c
    y_ref  : (1, TH*W, TC)         f32 conv output tile (flattened spatial)
    sum_ref, sq_ref : (1, TC)      resident f32 accumulators (reduced over n,h)
    acc_ref: (TH*W, TC)            f32 VMEM scratch accumulator
    """
    n = pl.program_id(1)
    h = pl.program_id(2)

    W = xp_ref.shape[2] - 2
    rows, _ = acc_ref.shape
    th = rows // W
    cin = xp_ref.shape[3]

    row0 = h * th
    for kh in range(3):
        for kw in range(3):
            # Ref-side tap slice: only the needed rows are read, accumulation
            # goes through VMEM scratch so vreg live ranges stay bounded.
            patch = xp_ref[0, pl.ds(row0 + kh, th), kw:kw + W, :]
            patch = patch.reshape(rows, cin)
            contrib = jnp.dot(patch, w_ref[kh * 3 + kw],
                              preferred_element_type=jnp.float32)
            if kh == 0 and kw == 0:
                acc_ref[...] = contrib
            else:
                acc_ref[...] += contrib

    acc = acc_ref[...]
    y_ref[0] = acc

    @pl.when(jnp.logical_and(n == 0, h == 0))
    def _():
        sum_ref[...] = jnp.zeros_like(sum_ref)
        sq_ref[...] = jnp.zeros_like(sq_ref)

    # Elementwise stats kept in f32 (v5e has no bf16 VPU path anyway).
    sum_ref[...] += jnp.sum(acc, axis=0, keepdims=True)
    sq_ref[...] += jnp.sum(acc * acc, axis=0, keepdims=True)


def _bn_relu_kernel(scale_ref, shift_ref, y_ref, o_ref):
    """Fused BatchNorm affine (precomputed scale/shift) + ReLU, lane-dense 2D tiles."""
    o_ref[...] = jnp.maximum(y_ref[...] * scale_ref[...] + shift_ref[...], 0.0)


def cd_conv3x3(x_nchw, weight_oihw, gamma, beta, eps=1e-5, th=None):
    """Forward pass of CD_conv3x3 (stride=1 path).

    x_nchw      : (N, Cin, H, W)   float32
    weight_oihw : (Cout, Cin, 3, 3) float32 (PyTorch Conv2d layout, no bias)
    gamma, beta : (Cout,) BatchNorm affine params
    returns     : (N, Cout, H, W) float32
    """
    # TODO(synk): stride>1 constructor option of the original module is not implemented.
    N, Cin, H, W = x_nchw.shape
    Cout = weight_oihw.shape[0]

    LANE = 128
    cin_p = _round_up(Cin, LANE)
    cout_p = _round_up(Cout, LANE)
    # 256-wide Cout tiles when possible (v6e/v7x MXU is 256x256), else 128.
    tc = 256 if cout_p % 256 == 0 else 128
    nc = cout_p // tc

    if th is None:
        th = _pick_th(H, W, tc)
    assert H % th == 0, (H, th)
    nh = H // th

    # One padded bf16 materialization: halo pad (+1 each side of H, W) and the
    # channel pad to 128 lanes are merged; bf16 halves HBM input traffic and
    # feeds the MXU at native throughput.
    x = jnp.transpose(x_nchw, (0, 2, 3, 1)).astype(jnp.bfloat16)       # NHWC
    xp = jnp.pad(x, ((0, 0), (1, 1), (1, 1), (0, cin_p - Cin)))

    w = jnp.transpose(weight_oihw, (2, 3, 1, 0))                        # (3,3,Cin,Cout)
    w = jnp.pad(w, ((0, 0), (0, 0), (0, cin_p - Cin), (0, cout_p - Cout)))
    w = w.reshape(9, cin_p, cout_p).astype(jnp.bfloat16)

    gamma_p = jnp.pad(gamma.astype(jnp.float32), (0, cout_p - Cout))
    beta_p = jnp.pad(beta.astype(jnp.float32), (0, cout_p - Cout))

    y, csum, csq = pl.pallas_call(
        _conv_stats_kernel,
        grid=(nc, N, nh),
        in_specs=[
            pl.BlockSpec((1, H + 2, W + 2, cin_p), lambda c, n, h: (n, 0, 0, 0)),
            pl.BlockSpec((9, cin_p, tc), lambda c, n, h: (0, 0, c)),
        ],
        out_specs=[
            pl.BlockSpec((1, th * W, tc), lambda c, n, h: (n, h, c)),
            pl.BlockSpec((1, tc), lambda c, n, h: (0, c)),
            pl.BlockSpec((1, tc), lambda c, n, h: (0, c)),
        ],
        out_shape=(
            jax.ShapeDtypeStruct((N, H * W, cout_p), jnp.float32),
            jax.ShapeDtypeStruct((1, cout_p), jnp.float32),
            jax.ShapeDtypeStruct((1, cout_p), jnp.float32),
        ),
        scratch_shapes=[pltpu.VMEM((th * W, tc), jnp.float32)],
        compiler_params=pltpu.CompilerParams(
            # Cout tiles are independent (megacore-parallel on v7x);
            # batch and H tiles are the BN-stats reduction axes.
            dimension_semantics=("parallel", "arbitrary", "arbitrary")),
    )(xp, w)

    # BatchNorm training-mode batch stats (biased variance) -> scale/shift,
    # computed once in plain JAX so the second kernel is a pure FMA + max.
    count = float(N * H * W)
    mean = csum[0] / count
    var = jnp.maximum(csq[0] / count - mean * mean, 0.0)
    scale = gamma_p * lax.rsqrt(var + eps)
    shift = beta_p - mean * scale

    R = N * H * W
    tr = R if R <= 1024 else 1024
    y2d = y.reshape(R, cout_p)

    out2d = pl.pallas_call(
        _bn_relu_kernel,
        grid=(pl.cdiv(R, tr),),
        in_specs=[
            pl.BlockSpec((1, cout_p), lambda r: (0, 0)),
            pl.BlockSpec((1, cout_p), lambda r: (0, 0)),
            pl.BlockSpec((tr, cout_p), lambda r: (r, 0)),
        ],
        out_specs=pl.BlockSpec((tr, cout_p), lambda r: (r, 0)),
        out_shape=jax.ShapeDtypeStruct((R, cout_p), jnp.float32),
        input_output_aliases={2: 0},   # write BN+ReLU in place over conv output
        compiler_params=pltpu.CompilerParams(
            dimension_semantics=("parallel",)),
    )(scale.reshape(1, cout_p), shift.reshape(1, cout_p), y2d)

    out = out2d.reshape(N, H, W, cout_p)[:, :, :, :Cout]
    return jnp.transpose(out, (0, 3, 1, 2))                             # NCHW


if __name__ == "__main__":
    key = jax.random.PRNGKey(0)
    kx, kw = jax.random.split(key)

    N, Cin, H, W, Cout = 2, 4, 16, 16, 8
    x = jax.random.normal(kx, (N, Cin, H, W), jnp.float32)
    # Deterministic synthetic Conv2d weight (PyTorch OIHW layout, no bias).
    weight = jax.random.normal(kw, (Cout, Cin, 3, 3), jnp.float32) * 0.1
    # BatchNorm2d default init: weight=1, bias=0.
    gamma = jnp.ones((Cout,), jnp.float32)
    beta = jnp.zeros((Cout,), jnp.float32)

    fwd = jax.jit(lambda xx, ww, g, b: cd_conv3x3(xx, ww, g, b, th=8))
    out = jax.block_until_ready(fwd(x, weight, gamma, beta))

    # Pure-JAX f32 reference (PyTorch training-mode BN: batch stats, biased var).
    y_ref = lax.conv_general_dilated(
        x, weight, window_strides=(1, 1), padding="SAME",
        dimension_numbers=("NCHW", "OIHW", "NCHW"))
    mean = y_ref.mean(axis=(0, 2, 3), keepdims=True)
    var = y_ref.var(axis=(0, 2, 3), keepdims=True)
    ref = jnp.maximum(
        (y_ref - mean) / jnp.sqrt(var + 1e-5) * gamma.reshape(1, -1, 1, 1)
        + beta.reshape(1, -1, 1, 1), 0.0)

    assert out.shape == (N, Cout, H, W), out.shape
    err = float(jnp.max(jnp.abs(out - ref)))
    # bf16 MXU inputs (f32 accumulation) vs f32 reference: tolerance loosened.
    assert jnp.allclose(out, ref, atol=2e-2, rtol=2e-2), err
    print("KERNEL_OK")
</pallas_src>

<mosaic_0001>
module attributes {stable_mosaic.version = 11 : i64} {
  func.func @_conv_stats_kernel(%arg0: i32, %arg1: i32, %arg2: i32, %arg3: memref<1x18x18x128xbf16, #tpu.memory_space<vmem>>, %arg4: memref<9x128x128xbf16, #tpu.memory_space<vmem>>, %arg5: memref<1x128x128xf32, #tpu.memory_space<vmem>>, %arg6: memref<1x128xf32, #tpu.memory_space<vmem>>, %arg7: memref<1x128xf32, #tpu.memory_space<vmem>>, %arg8: memref<128x128xf32, #tpu.memory_space<vmem>>) attributes {dimension_semantics = [#tpu.dimension_semantics<parallel>, #tpu.dimension_semantics<arbitrary>, #tpu.dimension_semantics<arbitrary>], iteration_bounds = array<i64: 1, 2, 2>, scalar_prefetch = 0 : i64, scratch_operands = 1 : i64, tpu.core_type = #tpu.core_type<tc>, window_params = [{transform_indices = @transform_0, window_bounds = array<i64: 1, 18, 18, 128>}, {transform_indices = @transform_1, window_bounds = array<i64: 9, 128, 128>}, {transform_indices = @transform_2, window_bounds = array<i64: 1, 128, 128>}, {transform_indices = @transform_3, window_bounds = array<i64: 1, 128>}, {transform_indices = @transform_4, window_bounds = array<i64: 1, 128>}]} {
    %c8_i32 = arith.constant 8 : i32
    %0 = arith.muli %arg2, %c8_i32 : i32
    %c0_i32 = arith.constant 0 : i32
    %1 = arith.addi %0, %c0_i32 : i32
    %c0 = arith.constant 0 : index
    %2 = arith.index_cast %1 : i32 to index
    %c0_0 = arith.constant 0 : index
    %c0_1 = arith.constant 0 : index
    %3 = vector.load %arg3[%c0, %2, %c0_0, %c0_1] : memref<1x18x18x128xbf16, #tpu.memory_space<vmem>>, vector<1x8x16x128xbf16>
    %4 = vector.shape_cast %3 : vector<1x8x16x128xbf16> to vector<8x16x128xbf16>
    %5 = vector.shape_cast %4 : vector<8x16x128xbf16> to vector<128x128xbf16>
    %c0_2 = arith.constant 0 : index
    %c0_3 = arith.constant 0 : index
    %c0_4 = arith.constant 0 : index
    %6 = vector.load %arg4[%c0_2, %c0_3, %c0_4] : memref<9x128x128xbf16, #tpu.memory_space<vmem>>, vector<1x128x128xbf16>
    %7 = vector.shape_cast %6 : vector<1x128x128xbf16> to vector<128x128xbf16>
    %cst = arith.constant dense<0.000000e+00> : vector<128x128xf32>
    %8 = tpu.matmul %5, %7, %cst {dimension_numbers = #tpu.dot_dimension_numbers<[1], [0], [0], [1], [0, 0, 1, 1], [], []>} : vector<128x128xbf16>, vector<128x128xbf16>, vector<128x128xf32> -> vector<128x128xf32>
    %c0_5 = arith.constant 0 : index
    %c0_6 = arith.constant 0 : index
    %9 = vector.load %arg8[%c0_5, %c0_6] : memref<128x128xf32, #tpu.memory_space<vmem>>, vector<128x128xf32>
    tpu.vector_store %arg8[%c0_5, %c0_6], %8 {strides = array<i32>} : memref<128x128xf32, #tpu.memory_space<vmem>>, vector<128x128xf32>,
    %c0_i32_7 = arith.constant 0 : i32
    %10 = arith.addi %0, %c0_i32_7 : i32
    %c0_8 = arith.constant 0 : index
    %11 = arith.index_cast %10 : i32 to index
    %c1 = arith.constant 1 : index
    %c0_9 = arith.constant 0 : index
    %12 = vector.load %arg3[%c0_8, %11, %c1, %c0_9] : memref<1x18x18x128xbf16, #tpu.memory_space<vmem>>, vector<1x8x16x128xbf16>
    %13 = vector.shape_cast %12 : vector<1x8x16x128xbf16> to vector<8x16x128xbf16>
    %14 = vector.shape_cast %13 : vector<8x16x128xbf16> to vector<128x128xbf16>
    %c1_10 = arith.constant 1 : index
    %c0_11 = arith.constant 0 : index
    %c0_12 = arith.constant 0 : index
    %15 = vector.load %arg4[%c1_10, %c0_11, %c0_12] : memref<9x128x128xbf16, #tpu.memory_space<vmem>>, vector<1x128x128xbf16>
    %16 = vector.shape_cast %15 : vector<1x128x128xbf16> to vector<128x128xbf16>
    %cst_13 = arith.constant dense<0.000000e+00> : vector<128x128xf32>
    %17 = tpu.matmul %14, %16, %cst_13 {dimension_numbers = #tpu.dot_dimension_numbers<[1], [0], [0], [1], [0, 0, 1, 1], [], []>} : vector<128x128xbf16>, vector<128x128xbf16>, vector<128x128xf32> -> vector<128x128xf32>
    %c0_14 = arith.constant 0 : index
    %c0_15 = arith.constant 0 : index
    %18 = vector.load %arg8[%c0_14, %c0_15] : memref<128x128xf32, #tpu.memory_space<vmem>>, vector<128x128xf32>
    %19 = arith.addf %18, %17 : vector<128x128xf32>
    %c0_16 = arith.constant 0 : index
    %c0_17 = arith.constant 0 : index
    %20 = vector.load %arg8[%c0_16, %c0_17] : memref<128x128xf32, #tpu.memory_space<vmem>>, vector<128x128xf32>
    tpu.vector_store %arg8[%c0_16, %c0_17], %19 {strides = array<i32>} : memref<128x128xf32, #tpu.memory_space<vmem>>, vector<128x128xf32>,
    %c0_i32_18 = arith.constant 0 : i32
    %21 = arith.addi %0, %c0_i32_18 : i32
    %c0_19 = arith.constant 0 : index
    %22 = arith.index_cast %21 : i32 to index
    %c2 = arith.constant 2 : index
    %c0_20 = arith.constant 0 : index
    %23 = vector.load %arg3[%c0_19, %22, %c2, %c0_20] : memref<1x18x18x128xbf16, #tpu.memory_space<vmem>>, vector<1x8x16x128xbf16>
    %24 = vector.shape_cast %23 : vector<1x8x16x128xbf16> to vector<8x16x128xbf16>
    %25 = vector.shape_cast %24 : vector<8x16x128xbf16> to vector<128x128xbf16>
    %c2_21 = arith.constant 2 : index
    %c0_22 = arith.constant 0 : index
    %c0_23 = arith.constant 0 : index
    %26 = vector.load %arg4[%c2_21, %c0_22, %c0_23] : memref<9x128x128xbf16, #tpu.memory_space<vmem>>, vector<1x128x128xbf16>
    %27 = vector.shape_cast %26 : vector<1x128x128xbf16> to vector<128x128xbf16>
    %cst_24 = arith.constant dense<0.000000e+00> : vector<128x128xf32>
    %28 = tpu.matmul %25, %27, %cst_24 {dimension_numbers = #tpu.dot_dimension_numbers<[1], [0], [0], [1], [0, 0, 1, 1], [], []>} : vector<128x128xbf16>, vector<128x128xbf16>, vector<128x128xf32> -> vector<128x128xf32>
    %c0_25 = arith.constant 0 : index
    %c0_26 = arith.constant 0 : index
    %29 = vector.load %arg8[%c0_25, %c0_26] : memref<128x128xf32, #tpu.memory_space<vmem>>, vector<128x128xf32>
    %30 = arith.addf %29, %28 : vector<128x128xf32>
    %c0_27 = arith.constant 0 : index
    %c0_28 = arith.constant 0 : index
    %31 = vector.load %arg8[%c0_27, %c0_28] : memref<128x128xf32, #tpu.memory_space<vmem>>, vector<128x128xf32>
    tpu.vector_store %arg8[%c0_27, %c0_28], %30 {strides = array<i32>} : memref<128x128xf32, #tpu.memory_space<vmem>>, vector<128x128xf32>,
    %c1_i32 = arith.constant 1 : i32
    %32 = arith.addi %0, %c1_i32 : i32
    %c0_29 = arith.constant 0 : index
    %33 = arith.index_cast %32 : i32 to index
    %c0_30 = arith.constant 0 : index
    %c0_31 = arith.constant 0 : index
    %34 = vector.load %arg3[%c0_29, %33, %c0_30, %c0_31] : memref<1x18x18x128xbf16, #tpu.memory_space<vmem>>, vector<1x8x16x128xbf16>
    %35 = vector.shape_cast %34 : vector<1x8x16x128xbf16> to vector<8x16x128xbf16>
    %36 = vector.shape_cast %35 : vector<8x16x128xbf16> to vector<128x128xbf16>
    %c3 = arith.constant 3 : index
    %c0_32 = arith.constant 0 : index
    %c0_33 = arith.constant 0 : index
    %37 = vector.load %arg4[%c3, %c0_32, %c0_33] : memref<9x128x128xbf16, #tpu.memory_space<vmem>>, vector<1x128x128xbf16>
    %38 = vector.shape_cast %37 : vector<1x128x128xbf16> to vector<128x128xbf16>
    %cst_34 = arith.constant dense<0.000000e+00> : vector<128x128xf32>
    %39 = tpu.matmul %36, %38, %cst_34 {dimension_numbers = #tpu.dot_dimension_numbers<[1], [0], [0], [1], [0, 0, 1, 1], [], []>} : vector<128x128xbf16>, vector<128x128xbf16>, vector<128x128xf32> -> vector<128x128xf32>
    %c0_35 = arith.constant 0 : index
    %c0_36 = arith.constant 0 : index
    %40 = vector.load %arg8[%c0_35, %c0_36] : memref<128x128xf32, #tpu.memory_space<vmem>>, vector<128x128xf32>
    %41 = arith.addf %40, %39 : vector<128x128xf32>
    %c0_37 = arith.constant 0 : index
    %c0_38 = arith.constant 0 : index
    %42 = vector.load %arg8[%c0_37, %c0_38] : memref<128x128xf32, #tpu.memory_space<vmem>>, vector<128x128xf32>
    tpu.vector_store %arg8[%c0_37, %c0_38], %41 {strides = array<i32>} : memref<128x128xf32, #tpu.memory_space<vmem>>, vector<128x128xf32>,
    %c1_i32_39 = arith.constant 1 : i32
    %43 = arith.addi %0, %c1_i32_39 : i32
    %c0_40 = arith.constant 0 : index
    %44 = arith.index_cast %43 : i32 to index
    %c1_41 = arith.constant 1 : index
    %c0_42 = arith.constant 0 : index
    %45 = vector.load %arg3[%c0_40, %44, %c1_41, %c0_42] : memref<1x18x18x128xbf16, #tpu.memory_space<vmem>>, vector<1x8x16x128xbf16>
    %46 = vector.shape_cast %45 : vector<1x8x16x128xbf16> to vector<8x16x128xbf16>
    %47 = vector.shape_cast %46 : vector<8x16x128xbf16> to vector<128x128xbf16>
    %c4 = arith.constant 4 : index
    %c0_43 = arith.constant 0 : index
    %c0_44 = arith.constant 0 : index
    %48 = vector.load %arg4[%c4, %c0_43, %c0_44] : memref<9x128x128xbf16, #tpu.memory_space<vmem>>, vector<1x128x128xbf16>
    %49 = vector.shape_cast %48 : vector<1x128x128xbf16> to vector<128x128xbf16>
    %cst_45 = arith.constant dense<0.000000e+00> : vector<128x128xf32>
    %50 = tpu.matmul %47, %49, %cst_45 {dimension_numbers = #tpu.dot_dimension_numbers<[1], [0], [0], [1], [0, 0, 1, 1], [], []>} : vector<128x128xbf16>, vector<128x128xbf16>, vector<128x128xf32> -> vector<128x128xf32>
    %c0_46 = arith.constant 0 : index
    %c0_47 = arith.constant 0 : index
    %51 = vector.load %arg8[%c0_46, %c0_47] : memref<128x128xf32, #tpu.memory_space<vmem>>, vector<128x128xf32>
    %52 = arith.addf %51, %50 : vector<128x128xf32>
    %c0_48 = arith.constant 0 : index
    %c0_49 = arith.constant 0 : index
    %53 = vector.load %arg8[%c0_48, %c0_49] : memref<128x128xf32, #tpu.memory_space<vmem>>, vector<128x128xf32>
    tpu.vector_store %arg8[%c0_48, %c0_49], %52 {strides = array<i32>} : memref<128x128xf32, #tpu.memory_space<vmem>>, vector<128x128xf32>,
    %c1_i32_50 = arith.constant 1 : i32
    %54 = arith.addi %0, %c1_i32_50 : i32
    %c0_51 = arith.constant 0 : index
    %55 = arith.index_cast %54 : i32 to index
    %c2_52 = arith.constant 2 : index
    %c0_53 = arith.constant 0 : index
    %56 = vector.load %arg3[%c0_51, %55, %c2_52, %c0_53] : memref<1x18x18x128xbf16, #tpu.memory_space<vmem>>, vector<1x8x16x128xbf16>
    %57 = vector.shape_cast %56 : vector<1x8x16x128xbf16> to vector<8x16x128xbf16>
    %58 = vector.shape_cast %57 : vector<8x16x128xbf16> to vector<128x128xbf16>
    %c5 = arith.constant 5 : index
    %c0_54 = arith.constant 0 : index
    %c0_55 = arith.constant 0 : index
    %59 = vector.load %arg4[%c5, %c0_54, %c0_55] : memref<9x128x128xbf16, #tpu.memory_space<vmem>>, vector<1x128x128xbf16>
    %60 = vector.shape_cast %59 : vector<1x128x128xbf16> to vector<128x128xbf16>
    %cst_56 = arith.constant dense<0.000000e+00> : vector<128x128xf32>
    %61 = tpu.matmul %58, %60, %cst_56 {dimension_numbers = #tpu.dot_dimension_numbers<[1], [0], [0], [1], [0, 0, 1, 1], [], []>} : vector<128x128xbf16>, vector<128x128xbf16>, vector<128x128xf32> -> vector<128x128xf32>
    %c0_57 = arith.constant 0 : index
    %c0_58 = arith.constant 0 : index
    %62 = vector.load %arg8[%c0_57, %c0_58] : memref<128x128xf32, #tpu.memory_space<vmem>>, vector<128x128xf32>
    %63 = arith.addf %62, %61 : vector<128x128xf32>
    %c0_59 = arith.constant 0 : index
    %c0_60 = arith.constant 0 : index
    %64 = vector.load %arg8[%c0_59, %c0_60] : memref<128x128xf32, #tpu.memory_space<vmem>>, vector<128x128xf32>
    tpu.vector_store %arg8[%c0_59, %c0_60], %63 {strides = array<i32>} : memref<128x128xf32, #tpu.memory_space<vmem>>, vector<128x128xf32>,
    %c2_i32 = arith.constant 2 : i32
    %65 = arith.addi %0, %c2_i32 : i32
    %c0_61 = arith.constant 0 : index
    %66 = arith.index_cast %65 : i32 to index
    %c0_62 = arith.constant 0 : index
    %c0_63 = arith.constant 0 : index
    %67 = vector.load %arg3[%c0_61, %66, %c0_62, %c0_63] : memref<1x18x18x128xbf16, #tpu.memory_space<vmem>>, vector<1x8x16x128xbf16>
    %68 = vector.shape_cast %67 : vector<1x8x16x128xbf16> to vector<8x16x128xbf16>
    %69 = vector.shape_cast %68 : vector<8x16x128xbf16> to vector<128x128xbf16>
    %c6 = arith.constant 6 : index
    %c0_64 = arith.constant 0 : index
    %c0_65 = arith.constant 0 : index
    %70 = vector.load %arg4[%c6, %c0_64, %c0_65] : memref<9x128x128xbf16, #tpu.memory_space<vmem>>, vector<1x128x128xbf16>
    %71 = vector.shape_cast %70 : vector<1x128x128xbf16> to vector<128x128xbf16>
    %cst_66 = arith.constant dense<0.000000e+00> : vector<128x128xf32>
    %72 = tpu.matmul %69, %71, %cst_66 {dimension_numbers = #tpu.dot_dimension_numbers<[1], [0], [0], [1], [0, 0, 1, 1], [], []>} : vector<128x128xbf16>, vector<128x128xbf16>, vector<128x128xf32> -> vector<128x128xf32>
    %c0_67 = arith.constant 0 : index
    %c0_68 = arith.constant 0 : index
    %73 = vector.load %arg8[%c0_67, %c0_68] : memref<128x128xf32, #tpu.memory_space<vmem>>, vector<128x128xf32>
    %74 = arith.addf %73, %72 : vector<128x128xf32>
    %c0_69 = arith.constant 0 : index
    %c0_70 = arith.constant 0 : index
    %75 = vector.load %arg8[%c0_69, %c0_70] : memref<128x128xf32, #tpu.memory_space<vmem>>, vector<128x128xf32>
    tpu.vector_store %arg8[%c0_69, %c0_70], %74 {strides = array<i32>} : memref<128x128xf32, #tpu.memory_space<vmem>>, vector<128x128xf32>,
    %c2_i32_71 = arith.constant 2 : i32
    %76 = arith.addi %0, %c2_i32_71 : i32
    %c0_72 = arith.constant 0 : index
    %77 = arith.index_cast %76 : i32 to index
    %c1_73 = arith.constant 1 : index
    %c0_74 = arith.constant 0 : index
    %78 = vector.load %arg3[%c0_72, %77, %c1_73, %c0_74] : memref<1x18x18x128xbf16, #tpu.memory_space<vmem>>, vector<1x8x16x128xbf16>
    %79 = vector.shape_cast %78 : vector<1x8x16x128xbf16> to vector<8x16x128xbf16>
    %80 = vector.shape_cast %79 : vector<8x16x128xbf16> to vector<128x128xbf16>
    %c7 = arith.constant 7 : index
    %c0_75 = arith.constant 0 : index
    %c0_76 = arith.constant 0 : index
    %81 = vector.load %arg4[%c7, %c0_75, %c0_76] : memref<9x128x128xbf16, #tpu.memory_space<vmem>>, vector<1x128x128xbf16>
    %82 = vector.shape_cast %81 : vector<1x128x128xbf16> to vector<128x128xbf16>
    %cst_77 = arith.constant dense<0.000000e+00> : vector<128x128xf32>
    %83 = tpu.matmul %80, %82, %cst_77 {dimension_numbers = #tpu.dot_dimension_numbers<[1], [0], [0], [1], [0, 0, 1, 1], [], []>} : vector<128x128xbf16>, vector<128x128xbf16>, vector<128x128xf32> -> vector<128x128xf32>
    %c0_78 = arith.constant 0 : index
    %c0_79 = arith.constant 0 : index
    %84 = vector.load %arg8[%c0_78, %c0_79] : memref<128x128xf32, #tpu.memory_space<vmem>>, vector<128x128xf32>
    %85 = arith.addf %84, %83 : vector<128x128xf32>
    %c0_80 = arith.constant 0 : index
    %c0_81 = arith.constant 0 : index
    %86 = vector.load %arg8[%c0_80, %c0_81] : memref<128x128xf32, #tpu.memory_space<vmem>>, vector<128x128xf32>
    tpu.vector_store %arg8[%c0_80, %c0_81], %85 {strides = array<i32>} : memref<128x128xf32, #tpu.memory_space<vmem>>, vector<128x128xf32>,
    %c2_i32_82 = arith.constant 2 : i32
    %87 = arith.addi %0, %c2_i32_82 : i32
    %c0_83 = arith.constant 0 : index
    %88 = arith.index_cast %87 : i32 to index
    %c2_84 = arith.constant 2 : index
    %c0_85 = arith.constant 0 : index
    %89 = vector.load %arg3[%c0_83, %88, %c2_84, %c0_85] : memref<1x18x18x128xbf16, #tpu.memory_space<vmem>>, vector<1x8x16x128xbf16>
    %90 = vector.shape_cast %89 : vector<1x8x16x128xbf16> to vector<8x16x128xbf16>
    %91 = vector.shape_cast %90 : vector<8x16x128xbf16> to vector<128x128xbf16>
    %c8 = arith.constant 8 : index
    %c0_86 = arith.constant 0 : index
    %c0_87 = arith.constant 0 : index
    %92 = vector.load %arg4[%c8, %c0_86, %c0_87] : memref<9x128x128xbf16, #tpu.memory_space<vmem>>, vector<1x128x128xbf16>
    %93 = vector.shape_cast %92 : vector<1x128x128xbf16> to vector<128x128xbf16>
    %cst_88 = arith.constant dense<0.000000e+00> : vector<128x128xf32>
    %94 = tpu.matmul %91, %93, %cst_88 {dimension_numbers = #tpu.dot_dimension_numbers<[1], [0], [0], [1], [0, 0, 1, 1], [], []>} : vector<128x128xbf16>, vector<128x128xbf16>, vector<128x128xf32> -> vector<128x128xf32>
    %c0_89 = arith.constant 0 : index
    %c0_90 = arith.constant 0 : index
    %95 = vector.load %arg8[%c0_89, %c0_90] : memref<128x128xf32, #tpu.memory_space<vmem>>, vector<128x128xf32>
    %96 = arith.addf %95, %94 : vector<128x128xf32>
    %c0_91 = arith.constant 0 : index
    %c0_92 = arith.constant 0 : index
    %97 = vector.load %arg8[%c0_91, %c0_92] : memref<128x128xf32, #tpu.memory_space<vmem>>, vector<128x128xf32>
    tpu.vector_store %arg8[%c0_91, %c0_92], %96 {strides = array<i32>} : memref<128x128xf32, #tpu.memory_space<vmem>>, vector<128x128xf32>,
    %c0_93 = arith.constant 0 : index
    %c0_94 = arith.constant 0 : index
    %98 = vector.load %arg8[%c0_93, %c0_94] : memref<128x128xf32, #tpu.memory_space<vmem>>, vector<128x128xf32>
    %c0_95 = arith.constant 0 : index
    %c0_96 = arith.constant 0 : index
    %c0_97 = arith.constant 0 : index
    %99 = vector.load %arg5[%c0_95, %c0_96, %c0_97] : memref<1x128x128xf32, #tpu.memory_space<vmem>>, vector<1x128x128xf32>
    %100 = vector.shape_cast %99 : vector<1x128x128xf32> to vector<128x128xf32>
    %101 = vector.shape_cast %98 : vector<128x128xf32> to vector<1x128x128xf32>
    tpu.vector_store %arg5[%c0_95, %c0_96, %c0_97], %101 {strides = array<i32>} : memref<1x128x128xf32, #tpu.memory_space<vmem>>, vector<1x128x128xf32>,
    %c0_i32_98 = arith.constant 0 : i32
    %102 = arith.cmpi eq, %arg1, %c0_i32_98 : i32
    %c0_i32_99 = arith.constant 0 : i32
    %103 = arith.cmpi eq, %arg2, %c0_i32_99 : i32
    %104 = arith.andi %102, %103 : i1
    %105 = arith.extui %104 : i1 to i32
    %c0_i32_100 = arith.constant 0 : i32
    %106 = arith.cmpi ne, %105, %c0_i32_100 : i32
    scf.if %106 {
      %cst_111 = arith.constant 0.000000e+00 : f32
      %118 = vector.broadcast %cst_111 : f32 to vector<1x128xf32>
      %c0_112 = arith.constant 0 : index
      %c0_113 = arith.constant 0 : index
      %119 = vector.load %arg6[%c0_112, %c0_113] : memref<1x128xf32, #tpu.memory_space<vmem>>, vector<1x128xf32>
      tpu.vector_store %arg6[%c0_112, %c0_113], %118 {strides = array<i32>} : memref<1x128xf32, #tpu.memory_space<vmem>>, vector<1x128xf32>,
      %cst_114 = arith.constant 0.000000e+00 : f32
      %120 = vector.broadcast %cst_114 : f32 to vector<1x128xf32>
      %c0_115 = arith.constant 0 : index
      %c0_116 = arith.constant 0 : index
      %121 = vector.load %arg7[%c0_115, %c0_116] : memref<1x128xf32, #tpu.memory_space<vmem>>, vector<1x128xf32>
      tpu.vector_store %arg7[%c0_115, %c0_116], %120 {strides = array<i32>} : memref<1x128xf32, #tpu.memory_space<vmem>>, vector<1x128xf32>,
    } else {
    }
    %c0_101 = arith.constant 0 : index
    %c0_102 = arith.constant 0 : index
    %107 = vector.load %arg6[%c0_101, %c0_102] : memref<1x128xf32, #tpu.memory_space<vmem>>, vector<1x128xf32>
    %cst_103 = arith.constant dense<0.000000e+00> : vector<128xf32>
    %108 = vector.multi_reduction <add>, %98, %cst_103 [0] : vector<128x128xf32> to vector<128xf32>
    %109 = vector.shape_cast %108 : vector<128xf32> to vector<1x128xf32>
    %110 = arith.addf %107, %109 : vector<1x128xf32>
    %c0_104 = arith.constant 0 : index
    %c0_105 = arith.constant 0 : index
    %111 = vector.load %arg6[%c0_104, %c0_105] : memref<1x128xf32, #tpu.memory_space<vmem>>, vector<1x128xf32>
    tpu.vector_store %arg6[%c0_104, %c0_105], %110 {strides = array<i32>} : memref<1x128xf32, #tpu.memory_space<vmem>>, vector<1x128xf32>,
    %c0_106 = arith.constant 0 : index
    %c0_107 = arith.constant 0 : index
    %112 = vector.load %arg7[%c0_106, %c0_107] : memref<1x128xf32, #tpu.memory_space<vmem>>, vector<1x128xf32>
    %113 = arith.mulf %98, %98 : vector<128x128xf32>
    %cst_108 = arith.constant dense<0.000000e+00> : vector<128xf32>
    %114 = vector.multi_reduction <add>, %113, %cst_108 [0] : vector<128x128xf32> to vector<128xf32>
    %115 = vector.shape_cast %114 : vector<128xf32> to vector<1x128xf32>
    %116 = arith.addf %112, %115 : vector<1x128xf32>
    %c0_109 = arith.constant 0 : index
    %c0_110 = arith.constant 0 : index
    %117 = vector.load %arg7[%c0_109, %c0_110] : memref<1x128xf32, #tpu.memory_space<vmem>>, vector<1x128xf32>
    tpu.vector_store %arg7[%c0_109, %c0_110], %116 {strides = array<i32>} : memref<1x128xf32, #tpu.memory_space<vmem>>, vector<1x128xf32>,
    return
  }
  func.func @transform_0(%arg0: i32, %arg1: i32, %arg2: i32) -> (i32, i32, i32, i32) {
    %c0_i32 = arith.constant 0 : i32
    %c0_i32_0 = arith.constant 0 : i32
    %c0_i32_1 = arith.constant 0 : i32
    %c0_i32_2 = arith.constant 0 : i32
    return %arg1, %c0_i32, %c0_i32_0, %c0_i32_1 : i32, i32, i32, i32
  }
  func.func @transform_1(%arg0: i32, %arg1: i32, %arg2: i32) -> (i32, i32, i32) {
    %c0_i32 = arith.constant 0 : i32
    %c0_i32_0 = arith.constant 0 : i32
    %c0_i32_1 = arith.constant 0 : i32
    return %c0_i32, %c0_i32_0, %arg0 : i32, i32, i32
  }
  func.func @transform_2(%arg0: i32, %arg1: i32, %arg2: i32) -> (i32, i32, i32) {
    %c0_i32 = arith.constant 0 : i32
    return %arg1, %arg2, %arg0 : i32, i32, i32
  }
  func.func @transform_3(%arg0: i32, %arg1: i32, %arg2: i32) -> (i32, i32) {
    %c0_i32 = arith.constant 0 : i32
    %c0_i32_0 = arith.constant 0 : i32
    return %c0_i32, %arg0 : i32, i32
  }
  func.func @transform_4(%arg0: i32, %arg1: i32, %arg2: i32) -> (i32, i32) {
    %c0_i32 = arith.constant 0 : i32
    %c0_i32_0 = arith.constant 0 : i32
    return %c0_i32, %arg0 : i32, i32
  }
}

module attributes {stable_mosaic.version = 11 : i64} {
  func.func @_bn_relu_kernel(%arg0: i32, %arg1: memref<1x128xf32, #tpu.memory_space<vmem>>, %arg2: memref<1x128xf32, #tpu.memory_space<vmem>>, %arg3: memref<512x128xf32, #tpu.memory_space<vmem>>, %arg4: memref<512x128xf32, #tpu.memory_space<vmem>>) attributes {dimension_semantics = [#tpu.dimension_semantics<parallel>], iteration_bounds = array<i64: 1>, scalar_prefetch = 0 : i64, scratch_operands = 0 : i64, tpu.core_type = #tpu.core_type<tc>, window_params = [{pipeline_mode = #tpu.pipeline_mode<synchronous>, transform_indices = @transform_0, window_bounds = array<i64: 1, 128>}, {pipeline_mode = #tpu.pipeline_mode<synchronous>, transform_indices = @transform_1, window_bounds = array<i64: 1, 128>}, {transform_indices = @transform_2, window_bounds = array<i64: 512, 128>}, {transform_indices = @transform_3, window_bounds = array<i64: 512, 128>}]} {
    %c0 = arith.constant 0 : index
    %c0_0 = arith.constant 0 : index
    %0 = vector.load %arg3[%c0, %c0_0] : memref<512x128xf32, #tpu.memory_space<vmem>>, vector<512x128xf32>
    %c0_1 = arith.constant 0 : index
    %c0_2 = arith.constant 0 : index
    %1 = vector.load %arg1[%c0_1, %c0_2] : memref<1x128xf32, #tpu.memory_space<vmem>>, vector<1x128xf32>
    %2 = vector.broadcast %1 : vector<1x128xf32> to vector<512x128xf32>
    %3 = arith.mulf %0, %2 : vector<512x128xf32>
    %c0_3 = arith.constant 0 : index
    %c0_4 = arith.constant 0 : index
    %4 = vector.load %arg2[%c0_3, %c0_4] : memref<1x128xf32, #tpu.memory_space<vmem>>, vector<1x128xf32>
    %5 = vector.broadcast %4 : vector<1x128xf32> to vector<512x128xf32>
    %6 = arith.addf %3, %5 : vector<512x128xf32>
    %cst = arith.constant 0.000000e+00 : f32
    %7 = vector.broadcast %cst : f32 to vector<512x128xf32>
    %8 = arith.maximumf %6, %7 : vector<512x128xf32>
    %c0_5 = arith.constant 0 : index
    %c0_6 = arith.constant 0 : index
    %9 = vector.load %arg4[%c0_5, %c0_6] : memref<512x128xf32, #tpu.memory_space<vmem>>, vector<512x128xf32>
    tpu.vector_store %arg4[%c0_5, %c0_6], %8 {strides = array<i32>} : memref<512x128xf32, #tpu.memory_space<vmem>>, vector<512x128xf32>,
    return
  }
  func.func @transform_0(%arg0: i32) -> (i32, i32) {
    %c0_i32 = arith.constant 0 : i32
    %c0_i32_0 = arith.constant 0 : i32
    %c0_i32_1 = arith.constant 0 : i32
    return %c0_i32, %c0_i32_0 : i32, i32
  }
  func.func @transform_1(%arg0: i32) -> (i32, i32) {
    %c0_i32 = arith.constant 0 : i32
    %c0_i32_0 = arith.constant 0 : i32
    %c0_i32_1 = arith.constant 0 : i32
    return %c0_i32, %c0_i32_0 : i32, i32
  }
  func.func @transform_2(%arg0: i32) -> (i32, i32) {
    %c0_i32 = arith.constant 0 : i32
    %c0_i32_0 = arith.constant 0 : i32
    return %arg0, %c0_i32 : i32, i32
  }
  func.func @transform_3(%arg0: i32) -> (i32, i32) {
    %c0_i32 = arith.constant 0 : i32
    %c0_i32_0 = arith.constant 0 : i32
    return %arg0, %c0_i32 : i32, i32
  }
}

</mosaic_0001>

<bundles_post_ra>
// kernel: _lambda_.3
= control target key start
LH: loop header
LB: loop body
LE: loop exit
PB: predicated region body
PF: predicated region fallthrough
CT: control target
= control target key end

     0   :  { %s896_s0 = inlined_call_operand.vmem [shape: f32[1,128], index: 0, kind: input, shape index: {}]   ;;  %s897_s1 = inlined_call_operand.vmem [shape: f32[1,128], index: 1, kind: input, shape index: {}]   ;;  %s898_s2 = inlined_call_operand.vmem [shape: f32[512,128], index: 2, kind: input, shape index: {}, may-alias: {2,3}]   ;;  %s899_s3 = inlined_call_operand.vmem [shape: f32[512,128], index: 3, kind: output, shape index: {}, may-alias: {2,3}]  }
   0x1   :  { %v14_v0 = vld [vmem:[%s898_s2] sm:$0xff]  ;;  %v15_v4 = vld [vmem:[%s898_s2 + $0x8] sm:$0xff]  ;;  %v16_v5 = vld [vmem:[%s898_s2 + $0x10] sm:$0xff] }
   0x2   :  { %v380_v1 = vld [vmem:[%s896_s0] ss:$0 sm:$0xff]  ;;  %v17_v6 = vld [vmem:[%s898_s2 + $0x18] sm:$0xff]  ;;  %v19_v11 = vld [vmem:[%s898_s2 + $0x28] sm:$0xff] }
   0x3   :  { %v385_v2 = vld [vmem:[%s897_s1] ss:$0 sm:$0xff]  ;;  %v85_v3 = vmul.f32 %v380_v1, %v14_v0  ;;  %v86_v7 = vmul.f32 %v380_v1, %v15_v4  ;;  %v87_v8 = vmul.f32 %v380_v1, %v16_v5  ;;  %v88_v9 = vmul.f32 %v380_v1, %v17_v6  ;;  %v20_v12 = vld [vmem:[%s898_s2 + $0x30] sm:$0xff]  ;;  %v21_v17 = vld [vmem:[%s898_s2 + $0x38] sm:$0xff] }
   0x4   :  { %v18_v10 = vld [vmem:[%s898_s2 + $0x20] sm:$0xff]  ;;  %v90_v15 = vmul.f32 %v380_v1, %v19_v11  ;;  %v91_v16 = vmul.f32 %v380_v1, %v20_v12  ;;  %v92_v21 = vmul.f32 %v380_v1, %v21_v17  ;;  %v23_v27 = vld [vmem:[%s898_s2 + $0x48] sm:$0xff]  ;;  %v24_v28 = vld [vmem:[%s898_s2 + $0x50] sm:$0xff] }
   0x5   :  { %v156_v13 = vadd.f32 %v385_v2, %v85_v3  ;;  %v89_v14 = vmul.f32 %v380_v1, %v18_v10  ;;  %v157_v18 = vadd.f32 %v385_v2, %v86_v7  ;;  %v158_v19 = vadd.f32 %v385_v2, %v87_v8  ;;  %v22_v22 = vld [vmem:[%s898_s2 + $0x40] sm:$0xff]  ;;  %v25_v29 = vld [vmem:[%s898_s2 + $0x58] sm:$0xff]  ;;  %v27_v35 = vld [vmem:[%s898_s2 + $0x68] sm:$0xff] }
   0x6   :  { %v159_v20 = vadd.f32 %v385_v2, %v88_v9  ;;  %v161_v25 = vadd.f32 %v385_v2, %v90_v15  ;;  %v162_v26 = vadd.f32 %v385_v2, %v91_v16  ;;  %v163_v33 = vadd.f32 %v385_v2, %v92_v21  ;;  %v26_v34 = vld [vmem:[%s898_s2 + $0x60] sm:$0xff]  ;;  %v28_v36 = vld [vmem:[%s898_s2 + $0x70] sm:$0xff] }
   0x7   :  { %v220_v23 = vmax.f32 %v156_v13, 0.0  ;;  %v160_v24 = vadd.f32 %v385_v2, %v89_v14  ;;  %v221_v30 = vmax.f32 %v157_v18, 0.0  ;;  %v222_v31 = vmax.f32 %v158_v19, 0.0 }
   0x8   :  { %v223_v32 = vmax.f32 %v159_v20, 0.0  ;;  %v225_v38 = vmax.f32 %v161_v25, 0.0  ;;  %v226_v39 = vmax.f32 %v162_v26, 0.0  ;;  %v93_v40 = vmul.f32 %v380_v1, %v22_v22 }
   0x9   :  { %284 = vst [vmem:[%s899_s3] sm:$0xff] %v220_v23  ;;  %v224_v37 = vmax.f32 %v160_v24, 0.0  ;;  %v227_v42 = vmax.f32 %v163_v33, 0.0  ;;  %v94_v43 = vmul.f32 %v380_v1, %v23_v27  ;;  %v95_v44 = vmul.f32 %v380_v1, %v24_v28 }
   0xa   :  { %v96_v45 = vmul.f32 %v380_v1, %v25_v29  ;;  %v164_v46 = vadd.f32 %v385_v2, %v93_v40  ;;  %v97_v47 = vmul.f32 %v380_v1, %v26_v34  ;;  %v98_v48 = vmul.f32 %v380_v1, %v27_v35 }
   0xb   :  { %v99_v49 = vmul.f32 %v380_v1, %v28_v36  ;;  %v165_v50 = vadd.f32 %v385_v2, %v94_v43  ;;  %v166_v51 = vadd.f32 %v385_v2, %v95_v44 }
   0xc   :  { %v167_v52 = vadd.f32 %v385_v2, %v96_v45  ;;  %v228_v55 = vmax.f32 %v164_v46, 0.0  ;;  %v168_v56 = vadd.f32 %v385_v2, %v97_v47  ;;  %v169_v57 = vadd.f32 %v385_v2, %v98_v48 }
   0xd   :  { %v170_v58 = vadd.f32 %v385_v2, %v99_v49  ;;  %v229_v62 = vmax.f32 %v165_v50, 0.0  ;;  %v230_v63 = vmax.f32 %v166_v51, 0.0 }
   0xe   :  { %v231_v0 = vmax.f32 %v167_v52, 0.0  ;;  %v232_v7 = vmax.f32 %v168_v56, 0.0  ;;  %v233_v8 = vmax.f32 %v169_v57, 0.0 }
   0xf   :  { %v234_v9 = vmax.f32 %v170_v58, 0.0 }
  0x10   :  { %v29_v41 = vld [vmem:[%s898_s2 + $0x78] sm:$0xff] }
  0x11   :  { %285 = vst [vmem:[%s899_s3 + $0x8] sm:$0xff] %v221_v30  ;;  %286 = vst [vmem:[%s899_s3 + $0x10] sm:$0xff] %v222_v31  ;;  %v100_v53 = vmul.f32 %v380_v1, %v29_v41 }
  0x12   :  { %287 = vst [vmem:[%s899_s3 + $0x18] sm:$0xff] %v223_v32  ;;  %288 = vst [vmem:[%s899_s3 + $0x20] sm:$0xff] %v224_v37 }
  0x13   :  { %289 = vst [vmem:[%s899_s3 + $0x28] sm:$0xff] %v225_v38  ;;  %290 = vst [vmem:[%s899_s3 + $0x30] sm:$0xff] %v226_v39  ;;  %v171_v3 = vadd.f32 %v385_v2, %v100_v53 }
  0x14   :  { %291 = vst [vmem:[%s899_s3 + $0x38] sm:$0xff] %v227_v42 }
  0x15   :  { %v235_v12 = vmax.f32 %v171_v3, 0.0 }
  0x1b   :  { %v30_v54 = vld [vmem:[%s898_s2 + $0x80] sm:$0xff]  ;;  %v31_v59 = vld [vmem:[%s898_s2 + $0x88] sm:$0xff]  ;;  %v32_v60 = vld [vmem:[%s898_s2 + $0x90] sm:$0xff] }
  0x1c   :  { %v33_v61 = vld [vmem:[%s898_s2 + $0x98] sm:$0xff]  ;;  %v34_v4 = vld [vmem:[%s898_s2 + $0xa0] sm:$0xff]  ;;  %v35_v5 = vld [vmem:[%s898_s2 + $0xa8] sm:$0xff]  ;;  %v101_v10 = vmul.f32 %v380_v1, %v30_v54  ;;  %v102_v13 = vmul.f32 %v380_v1, %v31_v59  ;;  %v103_v14 = vmul.f32 %v380_v1, %v32_v60 }
  0x1d   :  { %v36_v6 = vld [vmem:[%s898_s2 + $0xb0] sm:$0xff]  ;;  %v104_v15 = vmul.f32 %v380_v1, %v33_v61  ;;  %v105_v17 = vmul.f32 %v380_v1, %v34_v4  ;;  %v106_v18 = vmul.f32 %v380_v1, %v35_v5 }
  0x1e   :  { %292 = vst [vmem:[%s899_s3 + $0x40] sm:$0xff] %v228_v55  ;;  %v172_v16 = vadd.f32 %v385_v2, %v101_v10  ;;  %v107_v19 = vmul.f32 %v380_v1, %v36_v6  ;;  %v173_v20 = vadd.f32 %v385_v2, %v102_v13  ;;  %v174_v21 = vadd.f32 %v385_v2, %v103_v14 }
  0x1f   :  { %v175_v22 = vadd.f32 %v385_v2, %v104_v15  ;;  %v176_v26 = vadd.f32 %v385_v2, %v105_v17  ;;  %v177_v27 = vadd.f32 %v385_v2, %v106_v18 }
  0x20   :  { %v236_v25 = vmax.f32 %v172_v16, 0.0  ;;  %v178_v28 = vadd.f32 %v385_v2, %v107_v19  ;;  %v237_v32 = vmax.f32 %v173_v20, 0.0  ;;  %v238_v33 = vmax.f32 %v174_v21, 0.0 }
  0x21   :  { %v239_v34 = vmax.f32 %v175_v22, 0.0  ;;  %v240_v39 = vmax.f32 %v176_v26, 0.0  ;;  %v241_v40 = vmax.f32 %v177_v27, 0.0 }
  0x22   :  { %v242_v41 = vmax.f32 %v178_v28, 0.0 }
  0x25   :  { %v37_v11 = vld [vmem:[%s898_s2 + $0xb8] sm:$0xff] }
  0x26   :  { %293 = vst [vmem:[%s899_s3 + $0x48] sm:$0xff] %v229_v62  ;;  %294 = vst [vmem:[%s899_s3 + $0x50] sm:$0xff] %v230_v63  ;;  %v108_v23 = vmul.f32 %v380_v1, %v37_v11 }
  0x27   :  { %295 = vst [vmem:[%s899_s3 + $0x58] sm:$0xff] %v231_v0  ;;  %296 = vst [vmem:[%s899_s3 + $0x60] sm:$0xff] %v232_v7 }
  0x28   :  { %297 = vst [vmem:[%s899_s3 + $0x68] sm:$0xff] %v233_v8  ;;  %298 = vst [vmem:[%s899_s3 + $0x70] sm:$0xff] %v234_v9  ;;  %v179_v35 = vadd.f32 %v385_v2, %v108_v23 }
  0x29   :  { %299 = vst [vmem:[%s899_s3 + $0x78] sm:$0xff] %v235_v12 }
  0x2a   :  { %v243_v44 = vmax.f32 %v179_v35, 0.0 }
  0x30   :  { %v38_v24 = vld [vmem:[%s898_s2 + $0xc0] sm:$0xff]  ;;  %v39_v29 = vld [vmem:[%s898_s2 + $0xc8] sm:$0xff]  ;;  %v40_v30 = vld [vmem:[%s898_s2 + $0xd0] sm:$0xff] }
  0x31   :  { %v41_v31 = vld [vmem:[%s898_s2 + $0xd8] sm:$0xff]  ;;  %v42_v36 = vld [vmem:[%s898_s2 + $0xe0] sm:$0xff]  ;;  %v43_v37 = vld [vmem:[%s898_s2 + $0xe8] sm:$0xff]  ;;  %v109_v42 = vmul.f32 %v380_v1, %v38_v24  ;;  %v110_v45 = vmul.f32 %v380_v1, %v39_v29  ;;  %v111_v46 = vmul.f32 %v380_v1, %v40_v30 }
  0x32   :  { %v44_v38 = vld [vmem:[%s898_s2 + $0xf0] sm:$0xff]  ;;  %v112_v47 = vmul.f32 %v380_v1, %v41_v31  ;;  %v113_v49 = vmul.f32 %v380_v1, %v42_v36  ;;  %v114_v50 = vmul.f32 %v380_v1, %v43_v37 }
  0x33   :  { %300 = vst [vmem:[%s899_s3 + $0x80] sm:$0xff] %v236_v25  ;;  %v180_v48 = vadd.f32 %v385_v2, %v109_v42  ;;  %v115_v51 = vmul.f32 %v380_v1, %v44_v38  ;;  %v181_v52 = vadd.f32 %v385_v2, %v110_v45  ;;  %v182_v53 = vadd.f32 %v385_v2, %v111_v46 }
  0x34   :  { %v183_v54 = vadd.f32 %v385_v2, %v112_v47  ;;  %v184_v58 = vadd.f32 %v385_v2, %v113_v49  ;;  %v185_v59 = vadd.f32 %v385_v2, %v114_v50 }
  0x35   :  { %v244_v57 = vmax.f32 %v180_v48, 0.0  ;;  %v186_v60 = vadd.f32 %v385_v2, %v115_v51  ;;  %v245_v0 = vmax.f32 %v181_v52, 0.0  ;;  %v246_v3 = vmax.f32 %v182_v53, 0.0 }
  0x36   :  { %v247_v4 = vmax.f32 %v183_v54, 0.0  ;;  %v248_v9 = vmax.f32 %v184_v58, 0.0  ;;  %v249_v10 = vmax.f32 %v185_v59, 0.0 }
  0x37   :  { %v250_v11 = vmax.f32 %v186_v60, 0.0 }
  0x3a   :  { %v45_v43 = vld [vmem:[%s898_s2 + $0xf8] sm:$0xff] }
  0x3b   :  { %301 = vst [vmem:[%s899_s3 + $0x88] sm:$0xff] %v237_v32  ;;  %302 = vst [vmem:[%s899_s3 + $0x90] sm:$0xff] %v238_v33  ;;  %v116_v55 = vmul.f32 %v380_v1, %v45_v43 }
  0x3c   :  { %303 = vst [vmem:[%s899_s3 + $0x98] sm:$0xff] %v239_v34  ;;  %304 = vst [vmem:[%s899_s3 + $0xa0] sm:$0xff] %v240_v39 }
  0x3d   :  { %305 = vst [vmem:[%s899_s3 + $0xa8] sm:$0xff] %v241_v40  ;;  %306 = vst [vmem:[%s899_s3 + $0xb0] sm:$0xff] %v242_v41  ;;  %v187_v5 = vadd.f32 %v385_v2, %v116_v55 }
  0x3e   :  { %307 = vst [vmem:[%s899_s3 + $0xb8] sm:$0xff] %v243_v44 }
  0x3f   :  { %v251_v14 = vmax.f32 %v187_v5, 0.0 }
  0x45   :  { %v46_v56 = vld [vmem:[%s898_s2 + $0x100] sm:$0xff]  ;;  %v47_v61 = vld [vmem:[%s898_s2 + $0x108] sm:$0xff]  ;;  %v48_v62 = vld [vmem:[%s898_s2 + $0x110] sm:$0xff] }
  0x46   :  { %v49_v63 = vld [vmem:[%s898_s2 + $0x118] sm:$0xff]  ;;  %v50_v6 = vld [vmem:[%s898_s2 + $0x120] sm:$0xff]  ;;  %v51_v7 = vld [vmem:[%s898_s2 + $0x128] sm:$0xff]  ;;  %v117_v12 = vmul.f32 %v380_v1, %v46_v56  ;;  %v118_v15 = vmul.f32 %v380_v1, %v47_v61  ;;  %v119_v16 = vmul.f32 %v380_v1, %v48_v62 }
  0x47   :  { %v52_v8 = vld [vmem:[%s898_s2 + $0x130] sm:$0xff]  ;;  %v120_v17 = vmul.f32 %v380_v1, %v49_v63  ;;  %v121_v19 = vmul.f32 %v380_v1, %v50_v6  ;;  %v122_v20 = vmul.f32 %v380_v1, %v51_v7 }
  0x48   :  { %308 = vst [vmem:[%s899_s3 + $0xc0] sm:$0xff] %v244_v57  ;;  %v188_v18 = vadd.f32 %v385_v2, %v117_v12  ;;  %v123_v21 = vmul.f32 %v380_v1, %v52_v8  ;;  %v189_v22 = vadd.f32 %v385_v2, %v118_v15  ;;  %v190_v23 = vadd.f32 %v385_v2, %v119_v16 }
  0x49   :  { %v191_v24 = vadd.f32 %v385_v2, %v120_v17  ;;  %v192_v28 = vadd.f32 %v385_v2, %v121_v19  ;;  %v193_v29 = vadd.f32 %v385_v2, %v122_v20 }
  0x4a   :  { %v252_v27 = vmax.f32 %v188_v18, 0.0  ;;  %v194_v30 = vadd.f32 %v385_v2, %v123_v21  ;;  %v253_v34 = vmax.f32 %v189_v22, 0.0  ;;  %v254_v35 = vmax.f32 %v190_v23, 0.0 }
  0x4b   :  { %v255_v36 = vmax.f32 %v191_v24, 0.0  ;;  %v256_v41 = vmax.f32 %v192_v28, 0.0  ;;  %v257_v42 = vmax.f32 %v193_v29, 0.0 }
  0x4c   :  { %v258_v43 = vmax.f32 %v194_v30, 0.0 }
  0x4f   :  { %v53_v13 = vld [vmem:[%s898_s2 + $0x138] sm:$0xff] }
  0x50   :  { %309 = vst [vmem:[%s899_s3 + $0xc8] sm:$0xff] %v245_v0  ;;  %310 = vst [vmem:[%s899_s3 + $0xd0] sm:$0xff] %v246_v3  ;;  %v124_v25 = vmul.f32 %v380_v1, %v53_v13 }
  0x51   :  { %311 = vst [vmem:[%s899_s3 + $0xd8] sm:$0xff] %v247_v4  ;;  %312 = vst [vmem:[%s899_s3 + $0xe0] sm:$0xff] %v248_v9 }
  0x52   :  { %313 = vst [vmem:[%s899_s3 + $0xe8] sm:$0xff] %v249_v10  ;;  %314 = vst [vmem:[%s899_s3 + $0xf0] sm:$0xff] %v250_v11  ;;  %v195_v37 = vadd.f32 %v385_v2, %v124_v25 }
  0x53   :  { %315 = vst [vmem:[%s899_s3 + $0xf8] sm:$0xff] %v251_v14 }
  0x54   :  { %v259_v46 = vmax.f32 %v195_v37, 0.0 }
  0x5a   :  { %v54_v26 = vld [vmem:[%s898_s2 + $0x140] sm:$0xff]  ;;  %v55_v31 = vld [vmem:[%s898_s2 + $0x148] sm:$0xff]  ;;  %v56_v32 = vld [vmem:[%s898_s2 + $0x150] sm:$0xff] }
  0x5b   :  { %v57_v33 = vld [vmem:[%s898_s2 + $0x158] sm:$0xff]  ;;  %v58_v38 = vld [vmem:[%s898_s2 + $0x160] sm:$0xff]  ;;  %v59_v39 = vld [vmem:[%s898_s2 + $0x168] sm:$0xff]  ;;  %v125_v44 = vmul.f32 %v380_v1, %v54_v26  ;;  %v126_v47 = vmul.f32 %v380_v1, %v55_v31  ;;  %v127_v48 = vmul.f32 %v380_v1, %v56_v32 }
  0x5c   :  { %v60_v40 = vld [vmem:[%s898_s2 + $0x170] sm:$0xff]  ;;  %v128_v49 = vmul.f32 %v380_v1, %v57_v33  ;;  %v129_v51 = vmul.f32 %v380_v1, %v58_v38  ;;  %v130_v52 = vmul.f32 %v380_v1, %v59_v39 }
  0x5d   :  { %316 = vst [vmem:[%s899_s3 + $0x100] sm:$0xff] %v252_v27  ;;  %v196_v50 = vadd.f32 %v385_v2, %v125_v44  ;;  %v131_v53 = vmul.f32 %v380_v1, %v60_v40  ;;  %v197_v54 = vadd.f32 %v385_v2, %v126_v47  ;;  %v198_v55 = vadd.f32 %v385_v2, %v127_v48 }
  0x5e   :  { %v199_v56 = vadd.f32 %v385_v2, %v128_v49  ;;  %v200_v60 = vadd.f32 %v385_v2, %v129_v51  ;;  %v201_v61 = vadd.f32 %v385_v2, %v130_v52 }
  0x5f   :  { %v260_v59 = vmax.f32 %v196_v50, 0.0  ;;  %v202_v62 = vadd.f32 %v385_v2, %v131_v53  ;;  %v261_v4 = vmax.f32 %v197_v54, 0.0  ;;  %v262_v5 = vmax.f32 %v198_v55, 0.0 }
  0x60   :  { %v263_v6 = vmax.f32 %v199_v56, 0.0  ;;  %v264_v11 = vmax.f32 %v200_v60, 0.0  ;;  %v265_v12 = vmax.f32 %v201_v61, 0.0 }
  0x61   :  { %v266_v13 = vmax.f32 %v202_v62, 0.0 }
  0x64   :  { %v61_v45 = vld [vmem:[%s898_s2 + $0x178] sm:$0xff] }
  0x65   :  { %317 = vst [vmem:[%s899_s3 + $0x108] sm:$0xff] %v253_v34  ;;  %318 = vst [vmem:[%s899_s3 + $0x110] sm:$0xff] %v254_v35  ;;  %v132_v57 = vmul.f32 %v380_v1, %v61_v45 }
  0x66   :  { %319 = vst [vmem:[%s899_s3 + $0x118] sm:$0xff] %v255_v36  ;;  %320 = vst [vmem:[%s899_s3 + $0x120] sm:$0xff] %v256_v41 }
  0x67   :  { %321 = vst [vmem:[%s899_s3 + $0x128] sm:$0xff] %v257_v42  ;;  %322 = vst [vmem:[%s899_s3 + $0x130] sm:$0xff] %v258_v43  ;;  %v203_v7 = vadd.f32 %v385_v2, %v132_v57 }
  0x68   :  { %323 = vst [vmem:[%s899_s3 + $0x138] sm:$0xff] %v259_v46 }
  0x69   :  { %v267_v16 = vmax.f32 %v203_v7, 0.0 }
  0x6f   :  { %v62_v58 = vld [vmem:[%s898_s2 + $0x180] sm:$0xff]  ;;  %v63_v63 = vld [vmem:[%s898_s2 + $0x188] sm:$0xff]  ;;  %v64_v0 = vld [vmem:[%s898_s2 + $0x190] sm:$0xff] }
  0x70   :  { %v65_v3 = vld [vmem:[%s898_s2 + $0x198] sm:$0xff]  ;;  %v66_v8 = vld [vmem:[%s898_s2 + $0x1a0] sm:$0xff]  ;;  %v67_v9 = vld [vmem:[%s898_s2 + $0x1a8] sm:$0xff]  ;;  %v133_v14 = vmul.f32 %v380_v1, %v62_v58  ;;  %v134_v17 = vmul.f32 %v380_v1, %v63_v63  ;;  %v135_v18 = vmul.f32 %v380_v1, %v64_v0 }
  0x71   :  { %v68_v10 = vld [vmem:[%s898_s2 + $0x1b0] sm:$0xff]  ;;  %v136_v19 = vmul.f32 %v380_v1, %v65_v3  ;;  %v137_v21 = vmul.f32 %v380_v1, %v66_v8  ;;  %v138_v22 = vmul.f32 %v380_v1, %v67_v9 }
  0x72   :  { %324 = vst [vmem:[%s899_s3 + $0x140] sm:$0xff] %v260_v59  ;;  %v204_v20 = vadd.f32 %v385_v2, %v133_v14  ;;  %v139_v23 = vmul.f32 %v380_v1, %v68_v10  ;;  %v205_v24 = vadd.f32 %v385_v2, %v134_v17  ;;  %v206_v25 = vadd.f32 %v385_v2, %v135_v18 }
  0x73   :  { %v207_v26 = vadd.f32 %v385_v2, %v136_v19  ;;  %v208_v30 = vadd.f32 %v385_v2, %v137_v21  ;;  %v209_v31 = vadd.f32 %v385_v2, %v138_v22 }
  0x74   :  { %v268_v29 = vmax.f32 %v204_v20, 0.0  ;;  %v210_v32 = vadd.f32 %v385_v2, %v139_v23  ;;  %v269_v36 = vmax.f32 %v205_v24, 0.0  ;;  %v270_v37 = vmax.f32 %v206_v25, 0.0 }
  0x75   :  { %v271_v38 = vmax.f32 %v207_v26, 0.0  ;;  %v272_v43 = vmax.f32 %v208_v30, 0.0  ;;  %v273_v44 = vmax.f32 %v209_v31, 0.0 }
  0x76   :  { %v274_v45 = vmax.f32 %v210_v32, 0.0 }
  0x79   :  { %v69_v15 = vld [vmem:[%s898_s2 + $0x1b8] sm:$0xff] }
  0x7a   :  { %325 = vst [vmem:[%s899_s3 + $0x148] sm:$0xff] %v261_v4  ;;  %326 = vst [vmem:[%s899_s3 + $0x150] sm:$0xff] %v262_v5  ;;  %v140_v27 = vmul.f32 %v380_v1, %v69_v15 }
  0x7b   :  { %327 = vst [vmem:[%s899_s3 + $0x158] sm:$0xff] %v263_v6  ;;  %328 = vst [vmem:[%s899_s3 + $0x160] sm:$0xff] %v264_v11 }
  0x7c   :  { %329 = vst [vmem:[%s899_s3 + $0x168] sm:$0xff] %v265_v12  ;;  %330 = vst [vmem:[%s899_s3 + $0x170] sm:$0xff] %v266_v13  ;;  %v211_v39 = vadd.f32 %v385_v2, %v140_v27 }
  0x7d   :  { %331 = vst [vmem:[%s899_s3 + $0x178] sm:$0xff] %v267_v16 }
  0x7e   :  { %v275_v48 = vmax.f32 %v211_v39, 0.0 }
  0x84   :  { %v70_v28 = vld [vmem:[%s898_s2 + $0x1c0] sm:$0xff]  ;;  %v71_v33 = vld [vmem:[%s898_s2 + $0x1c8] sm:$0xff]  ;;  %v72_v34 = vld [vmem:[%s898_s2 + $0x1d0] sm:$0xff] }
  0x85   :  { %v73_v35 = vld [vmem:[%s898_s2 + $0x1d8] sm:$0xff]  ;;  %v74_v40 = vld [vmem:[%s898_s2 + $0x1e0] sm:$0xff]  ;;  %v75_v41 = vld [vmem:[%s898_s2 + $0x1e8] sm:$0xff]  ;;  %v141_v46 = vmul.f32 %v380_v1, %v70_v28  ;;  %v142_v49 = vmul.f32 %v380_v1, %v71_v33  ;;  %v143_v50 = vmul.f32 %v380_v1, %v72_v34 }
  0x86   :  { %v76_v42 = vld [vmem:[%s898_s2 + $0x1f0] sm:$0xff]  ;;  %v144_v51 = vmul.f32 %v380_v1, %v73_v35  ;;  %v145_v53 = vmul.f32 %v380_v1, %v74_v40  ;;  %v146_v54 = vmul.f32 %v380_v1, %v75_v41 }
  0x87   :  { %332 = vst [vmem:[%s899_s3 + $0x180] sm:$0xff] %v268_v29  ;;  %v212_v52 = vadd.f32 %v385_v2, %v141_v46  ;;  %v147_v55 = vmul.f32 %v380_v1, %v76_v42  ;;  %v213_v56 = vadd.f32 %v385_v2, %v142_v49  ;;  %v214_v57 = vadd.f32 %v385_v2, %v143_v50 }
  0x88   :  { %v215_v58 = vadd.f32 %v385_v2, %v144_v51  ;;  %v216_v61 = vadd.f32 %v385_v2, %v145_v53  ;;  %v217_v62 = vadd.f32 %v385_v2, %v146_v54 }
  0x89   :  { %v276_v60 = vmax.f32 %v212_v52, 0.0  ;;  %v218_v63 = vadd.f32 %v385_v2, %v147_v55  ;;  %v277_v0 = vmax.f32 %v213_v56, 0.0  ;;  %v278_v3 = vmax.f32 %v214_v57, 0.0 }
  0x8a   :  { %v279_v4 = vmax.f32 %v215_v58, 0.0  ;;  %v280_v6 = vmax.f32 %v216_v61, 0.0  ;;  %v281_v7 = vmax.f32 %v217_v62, 0.0 }
  0x8b   :  { %v282_v8 = vmax.f32 %v218_v63, 0.0 }
  0x8e   :  { %v77_v47 = vld [vmem:[%s898_s2 + $0x1f8] sm:$0xff] }
  0x8f   :  { %333 = vst [vmem:[%s899_s3 + $0x188] sm:$0xff] %v269_v36  ;;  %334 = vst [vmem:[%s899_s3 + $0x190] sm:$0xff] %v270_v37  ;;  %v148_v59 = vmul.f32 %v380_v1, %v77_v47 }
  0x90   :  { %335 = vst [vmem:[%s899_s3 + $0x198] sm:$0xff] %v271_v38  ;;  %336 = vst [vmem:[%s899_s3 + $0x1a0] sm:$0xff] %v272_v43 }
  0x91   :  { %337 = vst [vmem:[%s899_s3 + $0x1a8] sm:$0xff] %v273_v44  ;;  %338 = vst [vmem:[%s899_s3 + $0x1b0] sm:$0xff] %v274_v45  ;;  %v219_v5 = vadd.f32 %v385_v2, %v148_v59 }
  0x92   :  { %339 = vst [vmem:[%s899_s3 + $0x1b8] sm:$0xff] %v275_v48  ;;  %340 = vst [vmem:[%s899_s3 + $0x1c0] sm:$0xff] %v276_v60 }
  0x93   :  { %341 = vst [vmem:[%s899_s3 + $0x1c8] sm:$0xff] %v277_v0  ;;  %342 = vst [vmem:[%s899_s3 + $0x1d0] sm:$0xff] %v278_v3  ;;  %v283_v1 = vmax.f32 %v219_v5, 0.0 }
  0x94   :  { %343 = vst [vmem:[%s899_s3 + $0x1d8] sm:$0xff] %v279_v4  ;;  %344 = vst [vmem:[%s899_s3 + $0x1e0] sm:$0xff] %v280_v6 }
  0x95   :  { %345 = vst [vmem:[%s899_s3 + $0x1e8] sm:$0xff] %v281_v7  ;;  %346 = vst [vmem:[%s899_s3 + $0x1f0] sm:$0xff] %v282_v8 }
  0x96   :  { %347 = vst [vmem:[%s899_s3 + $0x1f8] sm:$0xff] %v283_v1 }

// kernel: _lambda_.2
= control target key start
LH: loop header
LB: loop body
LE: loop exit
PB: predicated region body
PF: predicated region fallthrough
CT: control target
= control target key end

     0   :  { %s4986_s15 = smov 0   ;;  %s4988_s16 = smov 0   ;;  %s5771_s0 = inlined_call_operand.vmem [shape: bf16[2,18,18,128], index: 0, kind: input, shape index: {}]   ;;  %s5772_s1 = inlined_call_operand.vmem [shape: bf16[9,128,128], index: 1, kind: input, shape index: {}]   ;;  %s5773_s2 = inlined_call_operand.vmem [shape: f32[2,256,128], index: 2, kind: output, shape index: {0}]   ;;  %s5774_s3 = inlined_call_operand.vmem [shape: f32[1,128], index: 3, kind: output, shape index: {1}]   ;;  %s5775_s4 = inlined_call_operand.vmem [shape: f32[1,128], index: 4, kind: output, shape index: {2}]  }
   0x1   :  { %s4990_s17 = smov 0   ;;  %s4992_s18 = smov 0  }
   0x2   :  { %s4994_s19 = smov 0  }
   0x3 LB: > { %s27_s20 = sadd.s32 1, %s4950_s17  ;;  %s30_s21 = sadd.s32 1, %s4954_s18  ;;  %s4958_s19 = sphi %s4994_s19, %s15_s19   ;;  %s4954_s18 = sphi %s4992_s18, %s5784_s18   ;;  %s4950_s17 = sphi %s4990_s17, %s5783_s17   ;;  %s4946_s16 = sphi %s4988_s16, %s5782_s16   ;;  %s4942_s15 = sphi %s4986_s15, %s5781_s15  }
   0x4   : > { %p28_p0 = scmp.ge.s32.totalorder %s27_s20, 2  ;;  %p3765_p1 = scmp.ge.s32.totalorder %s4958_s19, 1 }
   0x5   : > { %p199_p2 = scmp.lt.s32.totalorder %s4958_s19, 5 }
   0x6   : > { %s5786_s20 = smov (%p28_p0, %s27_s20), 0  ;;  %s5788_s21 = smov (!%p28_p0, %s30_s21), %s4954_s18 }
   0x7   : > { %p200_p3 = pnand %p3765_p1, %p199_p2  ;;  %p32_p4 = scmp.ge.s32.totalorder %s5788_s21, 2 }
   0x8   : > { %v4824_v0 = vld [vmem:[%s5772_s1] sm:$0xff] (!%p200_p3)   ;;  %p242_p5 = scmp.lt.s32.totalorder (!%p200_p3), %s4946_s16, 1  ;;  %v4826_v2 = vld [vmem:[%s5772_s1 + $0x8] sm:$0xff] (!%p200_p3)   ;;  %v4828_v4 = vld [vmem:[%s5772_s1 + $0x10] sm:$0xff] (!%p200_p3)   ;;  %s4205_s14 = smul.u32 (!%p200_p3), 96, %s4942_s15  ;;  %vm1025_vm3 = vcmask (!%p200_p3), 1042432  }
   0x9   : > { %s5790_s21 = smov (%p32_p4, %s5788_s21), 0  ;;  %203 = sbr.rel (%p200_p3) target bundleno = 460 (0x1cc), region = 28 }
   0xa   : > { %v4825_v1 = vld [vmem:[%s5772_s1 + $0x100] sm:$0xff] (!%p200_p3)   ;;  %4350 = vmatprep.subr.bf16.mxu1 (!%p200_p3), %v4824_v0  ;;  %v4827_v3 = vld [vmem:[%s5772_s1 + $0x108] sm:$0xff] (!%p200_p3)   ;;  %v4829_v5 = vld [vmem:[%s5772_s1 + $0x110] sm:$0xff] (!%p200_p3)   ;;  %vm540_vm0 = vsmask.f32 (!%p200_p3), 3328  ;;  %vm1026_vm4 = vcmask (!%p200_p3), 1046532  }
   0xb   : > { %4478 = vmatprep.subr.bf16.mxu0 (!%p200_p3), %v4825_v1  ;;  %4351 = vmatpush3.bf16.msra.mxu1 (!%p200_p3), %v4824_v0  ;;  %v4830_v6 = vld [vmem:[%s5772_s1 + $0x18] sm:$0xff] (!%p200_p3)   ;;  %v4832_v8 = vld [vmem:[%s5772_s1 + $0x20] sm:$0xff] (!%p200_p3)   ;;  %v4834_v10 = vld [vmem:[%s5772_s1 + $0x28] sm:$0xff] (!%p200_p3)   ;;  %vm541_vm1 = vsmask.f32 (!%p200_p3), 7440  ;;  %p3522_p6 = scmp.eq.s32.totalorder (!%p200_p3), %s4946_s16, 0 }
   0xc   : > { %4479 = vmatpush3.bf16.msra.mxu0 (!%p200_p3), %v4825_v1  ;;  %4352 = vmatprep.subr.bf16.mxu1 (!%p200_p3), %v4826_v2  ;;  %v4831_v7 = vld [vmem:[%s5772_s1 + $0x118] sm:$0xff] (!%p200_p3)   ;;  %v4833_v9 = vld [vmem:[%s5772_s1 + $0x120] sm:$0xff] (!%p200_p3)   ;;  %v4835_v11 = vld [vmem:[%s5772_s1 + $0x128] sm:$0xff] (!%p200_p3)   ;;  %p3523_p7 = scmp.eq.s32.totalorder (!%p200_p3), %s4942_s15, 0 }
   0xd   : > { %4480 = vmatprep.subr.bf16.mxu0 (!%p200_p3), %v4827_v3  ;;  %v4836_v18 = vld [vmem:[%s5772_s1 + $0x30] sm:$0xff] (!%p200_p3)   ;;  %v4838_v32 = vld [vmem:[%s5772_s1 + $0x38] sm:$0xff] (!%p200_p3)   ;;  %vm5085_vm2 = vmor (!%p200_p3), %vm540_vm0, %vm541_vm1 }
   0xe   : > { %v4837_v24 = vld [vmem:[%s5772_s1 + $0x130] sm:$0xff] (!%p200_p3)   ;;  %v4839_v38 = vld [vmem:[%s5772_s1 + $0x138] sm:$0xff] (!%p200_p3)   ;;  %v4842_v49 = vld [vmem:[%s5772_s1 + $0x40] sm:$0xff] (!%p200_p3)   ;;  %p5673_p8 = pnand (!%p200_p3), %p3523_p7, %p3522_p6 }
   0xf   : > { %4353 = vmatpush3.bf16.msra.mxu1 (!%p200_p3), %v4826_v2  ;;  %v4843_v55 = vld [vmem:[%s5772_s1 + $0x140] sm:$0xff] (!%p200_p3)   ;;  %v4844_v2 = vld [vmem:[%s5772_s1 + $0x48] sm:$0xff] (!%p200_p3)   ;;  %vm5207_vm5 = vmor (!%p200_p3), %vm1025_vm3, %vm1026_vm4 }
  0x10   : > { %s5034_s30 = scalar_select %p242_p5, %s4946_s16, 1  ;;  %4481 = vmatpush3.bf16.msra.mxu0 %v4827_v3  ;;  %4354 = vmatprep.subr.bf16.mxu1 %v4828_v4 }
  0x11   : > { %4482 = vmatprep.subr.bf16.mxu0 %v4829_v5  ;;  %s3767_s16 = sshll.u32 %s4942_s15, 4 }
  0x12   : > { %s4782_s9 = smul.u32 216, %s5034_s30  ;;  %p254_p9 = scmp.lt.s32.totalorder %s3767_s16, 31 }
  0x13   : > { %4355 = vmatpush3.bf16.msra.mxu1 %v4828_v4  ;;  %s3768_s10 = sshll.u32 %s5034_s30, 5 }
  0x14   : > { %s246_s24 = scalar_lea.vmem %s5771_s0, %s4782_s9  ;;  %4483 = vmatpush3.bf16.msra.mxu0 %v4829_v5  ;;  %4356 = vmatprep.subr.bf16.mxu1 %v4830_v6  ;;  %s5792_s16 = smov (!%p254_p9, %s3767_s16), 31 }
  0x15   : > { %4484 = vmatprep.subr.bf16.mxu0 %v4831_v7  ;;  %s5062_s6 = scalar_lea.vmem %s246_s24, %s4205_s14  ;;  %s260_s11 = sadd.s32 %s3768_s10, %s5792_s16 }
  0x16   : > { %v4840_v12 = vld [vmem:[%s5062_s6] sm:$0xff]   ;;  %v3911_v13 = vld [vmem:[%s5062_s6 + $0xc] sm:$0xf]  ;;  %v3912_v14 = vld [vmem:[%s5062_s6 + $0x10] sm:$0xf]  ;;  %s3769_s15 = sshll.u32 %s260_s11, 3 }
  0x17   : > { %4357 = vmatpush3.bf16.msra.mxu1 %v4830_v6  ;;  %4366 = vmatprep.mubr.bf16.mxu1 %v4840_v12  ;;  %v3913_v15 = vld [vmem:[%s5062_s6 + $0x14] sm:$0x1]  ;;  %v1629_v16 = vshrl.u32 %v3911_v13, 16  ;;  %v1632_v17 = vshll.u32 %v3911_v13, 16  ;;  %v1638_v19 = vshll.u32 %v3912_v14, 16  ;;  %v1642_v20 = vshrl.u32 %v3912_v14, 16  ;;  %s5690_s14 = scalar_lea.vmem %s5773_s2, %s3769_s15 }
  0x18   : > { %4485 = vmatpush3.bf16.msra.mxu0 %v4831_v7  ;;  %4358 = vmatprep.subr.bf16.mxu1 %v4832_v8  ;;  %v1648_v21 = vshll.u32 %v3913_v15, 16  ;;  %v3914_v29 = vld [vmem:[%s5062_s6 + $0x18] sm:$0xf]  ;;  %v3915_v30 = vld [vmem:[%s5062_s6 + $0x1c] sm:$0xf]  ;;  %v4841_v52 = vld [vmem:[%s5062_s6 + $0xc] sm:$0xff]  }
  0x19   : > { %4486 = vmatprep.subr.bf16.mxu0 %v4833_v9  ;;  %v1631_v22 = vrot.slane %v1629_v16, 4  ;;  %v1634_v23 = vrot.slane %v1632_v17, 5  ;;  %v1640_v25 = vrot.slane %v1638_v19, 5  ;;  %v1644_v26 = vrot.slane %v1642_v20, 4  ;;  %v3916_v31 = vld [vmem:[%s5062_s6 + $0x20] sm:$0x1] }
  0x1a   : > { %v1650_v27 = vrot.slane %v1648_v21, 5  ;;  %v1653_v35 = vshrl.u32 %v3914_v29, 16  ;;  %v1656_v36 = vshll.u32 %v3914_v29, 16  ;;  %v1662_v37 = vshll.u32 %v3915_v30, 16  ;;  %v3917_v56 = vld [vmem:[%s5062_s6 + $0x24] sm:$0xf] }
  0x1b   : > { %4359 = vmatpush3.bf16.msra.mxu1 %v4832_v8  ;;  %v1635_v28 = vor.u32 %v1634_v23, %v1631_v22  ;;  %v1645_v34 = vor.u32 %v1644_v26, %v1640_v25  ;;  %v1666_v40 = vshrl.u32 %v3915_v30, 16  ;;  %v1672_v41 = vshll.u32 %v3916_v31, 16  ;;  %v3918_v58 = vld [vmem:[%s5062_s6 + $0x28] sm:$0xf]  ;;  %v3919_v59 = vld [vmem:[%s5062_s6 + $0x2c] sm:$0x1] }
  0x1c   : > { %4487 = vmatpush3.bf16.msra.mxu0 %v4833_v9  ;;  %4360 = vmatprep.subr.bf16.mxu1 %v4834_v10  ;;  %v1655_v43 = vrot.slane %v1653_v35, 4  ;;  %v1658_v44 = vrot.slane %v1656_v36, 5  ;;  %v1664_v45 = vrot.slane %v1662_v37, 5  ;;  %v1677_v60 = vshrl.u32 %v3917_v56, 16  ;;  %v4845_v6 = vld [vmem:[%s5772_s1 + $0x148] sm:$0xff]   ;;  %v4848_v16 = vld [vmem:[%s5772_s1 + $0x50] sm:$0xff]  }
  0x1d   : > { %4488 = vmatprep.subr.bf16.mxu0 %v4835_v11  ;;  %v1636_v39 = vrot.slane %v1635_v28, 4  ;;  %v1646_v42 = vrot.slane %v1645_v34, 4  ;;  %v1668_v47 = vrot.slane %v1666_v40, 4  ;;  %v1674_v54 = vrot.slane %v1672_v41, 5  ;;  %v3920_v13 = vld [vmem:[%s5062_s6 + $0x30] sm:$0xf] }
  0x1e   : > { %v1659_v50 = vor.u32 %v1658_v44, %v1655_v43  ;;  %v1680_v62 = vshll.u32 %v3917_v56, 16  ;;  %v1686_v63 = vshll.u32 %v3918_v58, 16  ;;  %v1690_v0 = vshrl.u32 %v3918_v58, 16  ;;  %v3921_v17 = vld [vmem:[%s5062_s6 + $0x34] sm:$0xf]  ;;  %v4851_v41 = vld [vmem:[%s5772_s1 + $0x158] sm:$0xff]  }
  0x1f   : > { %4361 = vmatpush3.bf16.msra.mxu1 %v4834_v10  ;;  %v1641_v46 = vsel %vm5085_vm2, %v1636_v39, %v1640_v25  ;;  %v1651_v48 = vsel %vm5085_vm2, %v1646_v42, %v1650_v27  ;;  %v1669_v53 = vor.u32 %v1668_v47, %v1664_v45  ;;  %v1679_v3 = vrot.slane %v1677_v60, 4  ;;  %v4847_v27 = vld [vmem:[%s5062_s6 + $0x24] sm:$0xff]   ;;  %v4852_v34 = vld [vmem:[%s5062_s6 + $0x30] sm:$0xff]   ;;  %v3923_v42 = vld [vmem:[%s5062_s6 + $0x3c] sm:$0xf] }
  0x20   : > { %4489 = vmatpush3.bf16.msra.mxu0 %v4835_v11  ;;  %4362 = vmatprep.subr.bf16.mxu1 %v4836_v18  ;;  %v3951_v51 = vcombine.low %v1641_v46, %v1651_v48  ;;  %v1660_v57 = vrot.slane %v1659_v50, 4  ;;  %v1696_v4 = vshll.u32 %v3919_v59, 16  ;;  %v1682_v7 = vrot.slane %v1680_v62, 5  ;;  %v4846_v11 = vld [vmem:[%s5062_s6 + $0x18] sm:$0xff]   ;;  %v3924_v44 = vld [vmem:[%s5062_s6 + $0x40] sm:$0xf] }
  0x21   : > { %4490 = vmatprep.subr.bf16.mxu0 %v4837_v24  ;;  %v1670_v61 = vrot.slane %v1669_v53, 4  ;;  %v1688_v8 = vrot.slane %v1686_v63, 5  ;;  %v1692_v9 = vrot.slane %v1690_v0, 4  ;;  %v1701_v19 = vshrl.u32 %v3920_v13, 16  ;;  %v4854_v58 = vld [vmem:[%s5772_s1 + $0x60] sm:$0xff]  }
  0x22   : > { %4494 = vmatprep.mubr.bf16.mxu0 %v3951_v51  ;;  %v1665_v1 = vsel %vm5085_vm2, %v1660_v57, %v1664_v45  ;;  %v1698_v12 = vrot.slane %v1696_v4, 5  ;;  %v1683_v14 = vor.u32 %v1682_v7, %v1679_v3  ;;  %v1704_v20 = vshll.u32 %v3920_v13, 16  ;;  %v3925_v45 = vld [vmem:[%s5062_s6 + $0x44] sm:$0x1]  ;;  %v4856_v13 = vld [vmem:[%s5772_s1 + $0x68] sm:$0xff]  }
  0x23   : > { %4363 = vmatpush3.bf16.msra.mxu1 %v4836_v18  ;;  %v1675_v5 = vsel %vm5085_vm2, %v1670_v61, %v1674_v54  ;;  %v1693_v15 = vor.u32 %v1692_v9, %v1688_v8  ;;  %v3922_v18 = vld [vmem:[%s5062_s6 + $0x38] sm:$0x1]  ;;  %v1710_v21 = vshll.u32 %v3921_v17, 16  ;;  %v1714_v22 = vshrl.u32 %v3921_v17, 16  ;;  %v3926_v61 = vld [vmem:[%s5062_s6 + $0x48] sm:$0xf] }
  0x24   : > { %4491 = vmatpush3.bf16.msra.mxu0 %v4837_v24  ;;  %4364 = vmatprep.subr.bf16.mxu1 %v4838_v32  ;;  %v3952_v10 = vcombine.low %v1665_v1, %v1675_v5  ;;  %v1720_v23 = vshll.u32 %v3922_v18, 16  ;;  %v4849_v24 = vld [vmem:[%s5772_s1 + $0x150] sm:$0xff]   ;;  %v1684_v25 = vrot.slane %v1683_v14, 4  ;;  %v1703_v28 = vrot.slane %v1701_v19, 4  ;;  %v4855_v62 = vld [vmem:[%s5772_s1 + $0x160] sm:$0xff]   ;;  %v4857_v14 = vld [vmem:[%s5772_s1 + $0x168] sm:$0xff]  }
  0x25   : > { %4492 = vmatprep.subr.bf16.mxu0 %v4839_v38  ;;  %v1694_v26 = vrot.slane %v1693_v15, 4  ;;  %v1706_v29 = vrot.slane %v1704_v20, 5  ;;  %v1712_v30 = vrot.slane %v1710_v21, 5  ;;  %v1716_v31 = vrot.slane %v1714_v22, 4  ;;  %v3927_v1 = vld [vmem:[%s5062_s6 + $0x4c] sm:$0xf] }
  0x26   : > { %v1689_v35 = vsel %vm5085_vm2, %v1684_v25, %v1688_v8  ;;  %v1725_v46 = vshrl.u32 %v3923_v42, 16  ;;  %v1728_v48 = vshll.u32 %v3923_v42, 16  ;;  %v1738_v50 = vshrl.u32 %v3924_v44, 16  ;;  %v4853_v5 = vld [vmem:[%s5062_s6 + $0x3c] sm:$0xff]   ;;  %v4858_v18 = vld [vmem:[%s5062_s6 + $0x48] sm:$0xff]  }
  0x27   : > { %4365 = vmatpush3.bf16.msra.mxu1 %v4838_v32  ;;  %v1722_v32 = vrot.slane %v1720_v23, 5  ;;  %v1699_v36 = vsel %vm5085_vm2, %v1694_v26, %v1698_v12  ;;  %v1707_v37 = vor.u32 %v1706_v29, %v1703_v28  ;;  %v1717_v40 = vor.u32 %v1716_v31, %v1712_v30  ;;  %v3930_v26 = vld [vmem:[%s5062_s6 + $0x58] sm:$0xf] }
  0x28   : > { %4493 = vmatpush3.bf16.msra.mxu0 %v4839_v38  ;;  %4382 = vmatprep.subr.bf16.mxu1 %v4842_v49  ;;  %v4850_v38 = vld [vmem:[%s5772_s1 + $0x58] sm:$0xff]   ;;  %v3953_v39 = vcombine.low %v1689_v35, %v1699_v36  ;;  %v1744_v53 = vshll.u32 %v3925_v45, 16  ;;  %v1740_v57 = vrot.slane %v1738_v50, 4  ;;  %v1749_v3 = vshrl.u32 %v3926_v61, 16  ;;  %v3933_v50 = vld [vmem:[%s5062_s6 + $0x64] sm:$0xf] }
  0x29   : > { %4510 = vmatprep.subr.bf16.mxu0 %v4843_v55  ;;  %v1708_v43 = vrot.slane %v1707_v37, 4  ;;  %v1718_v47 = vrot.slane %v1717_v40, 4  ;;  %v1752_v4 = vshll.u32 %v3926_v61, 16  ;;  %v1762_v7 = vshrl.u32 %v3927_v1, 16  ;;  %v4859_v37 = vld [vmem:[%s5062_s6 + $0x54] sm:$0xff]  }
  0x2a   : > { %4367 = vmatmul.mubr.bf16.vlgmr.msra.gmra.mrb[0].mxu1 %v4841_v52  ;;  %v1727_v52 = vrot.slane %v1725_v46, 4  ;;  %v1746_v60 = vrot.slane %v1744_v53, 5  ;;  %v1782_v31 = vshll.u32 %v3930_v26, 16  ;;  %v3932_v46 = vld [vmem:[%s5062_s6 + $0x60] sm:$0xf] }
  0x2b   : > { %4495 = vmatmul.mubr.bf16.vlgmr.msra.gmra.mrb[0].mxu0 %v3952_v10  ;;  %4383 = vmatpush3.bf16.msra.mxu1 %v4842_v49  ;;  %v1734_v49 = vshll.u32 %v3924_v44, 16  ;;  %v1713_v51 = vsel %vm5085_vm2, %v1708_v43, %v1712_v30  ;;  %v1723_v54 = vsel %vm5085_vm2, %v1718_v47, %v1722_v32  ;;  %v1754_v12 = vrot.slane %v1752_v4, 5  ;;  %v4861_v43 = vld [vmem:[%s5772_s1 + $0x170] sm:$0xff]   ;;  %v4862_v47 = vld [vmem:[%s5772_s1 + $0x78] sm:$0xff]  }
  0x2c   : > { %4511 = vmatpush3.bf16.msra.mxu0 %v4843_v55  ;;  %4384 = vmatprep.subr.bf16.mxu1 %v4844_v2  ;;  %v1730_v55 = vrot.slane %v1728_v48, 5  ;;  %v3954_v59 = vcombine.low %v1713_v51, %v1723_v54  ;;  %v1786_v32 = vshrl.u32 %v3930_v26, 16  ;;  %v3934_v51 = vld [vmem:[%s5062_s6 + $0x68] sm:$0x1]  ;;  %v1800_v53 = vshll.u32 %v3932_v46, 16  ;;  %v5216_v26 = vld [vmem:[%s5772_s1 + $0x180] sm:$0xff]  }
  0x2d   : > { %4512 = vmatprep.subr.bf16.mxu0 %v4845_v6  ;;  %4370 = vmatprep.mubr.bf16.mxu1 %v4846_v11  ;;  %v1736_v56 = vrot.slane %v1734_v49, 5  ;;  %v1751_v11 = vrot.slane %v1749_v3, 4  ;;  %v1806_v54 = vshll.u32 %v3933_v50, 16 }
  0x2e   : > { %4498 = vmatprep.mubr.bf16.mxu0 %v3953_v39  ;;  %v1731_v63 = vor.u32 %v1730_v55, %v1727_v52  ;;  %v1788_v42 = vrot.slane %v1786_v32, 4  ;;  %v1797_v52 = vshrl.u32 %v3932_v46, 16  ;;  %v1810_v55 = vshrl.u32 %v3933_v50, 16 }
  0x2f   : > { %4385 = vmatpush3.bf16.msra.mxu1 %v4844_v2  ;;  %v1741_v0 = vor.u32 %v1740_v57, %v1736_v56  ;;  %v3928_v2 = vld [vmem:[%s5062_s6 + $0x50] sm:$0x1]  ;;  %v1755_v21 = vor.u32 %v1754_v12, %v1751_v11  ;;  %v4863_v57 = vld [vmem:[%s5772_s1 + $0x178] sm:$0xff]   ;;  %v1802_v61 = vrot.slane %v1800_v53, 5 }
  0x30   : > { %4513 = vmatpush3.bf16.msra.mxu0 %v4845_v6  ;;  %4386 = vmatprep.subr.bf16.mxu1 %v4848_v16  ;;  %v1758_v6 = vshll.u32 %v3927_v1, 16  ;;  %v1768_v8 = vshll.u32 %v3928_v2, 16  ;;  %v1732_v9 = vrot.slane %v1731_v63, 4  ;;  %v1812_v63 = vrot.slane %v1810_v55, 4  ;;  %v5192_v1 = vld [vmem:[%s5772_s1 + $0x80] sm:$0xff]  }
  0x31   : > { %4514 = vmatprep.subr.bf16.mxu0 %v4849_v24  ;;  %v1742_v10 = vrot.slane %v1741_v0, 4  ;;  %v1756_v25 = vrot.slane %v1755_v21, 4 }
  0x32   : > { %4371 = vmatmul.mubr.bf16.gmra.mrb[4].mxu1 %v4847_v27  ;;  %v1760_v15 = vrot.slane %v1758_v6, 5  ;;  %v1770_v17 = vrot.slane %v1768_v8, 5  ;;  %v1737_v19 = vsel %vm5085_vm2, %v1732_v9, %v1736_v56  ;;  %v3931_v27 = vld [vmem:[%s5062_s6 + $0x5c] sm:$0x1]  ;;  %v1816_v56 = vshll.u32 %v3934_v51, 16 }
  0x33   : > { %4387 = vmatpush3.bf16.msra.mxu1 %v4848_v16  ;;  %4374 = vmatprep.mubr.bf16.mxu1 %v4852_v34  ;;  %v1764_v16 = vrot.slane %v1762_v7, 4  ;;  %v1747_v20 = vsel %vm5085_vm2, %v1742_v10, %v1746_v60  ;;  %v1792_v36 = vshll.u32 %v3931_v27, 16  ;;  %v1799_v60 = vrot.slane %v1797_v52, 4  ;;  %v516_v7 = vld [vmem:[%s5062_s6] sm:$0xf] }
  0x34   : > { %4515 = vmatpush3.bf16.msra.mxu0 %v4849_v24  ;;  %4388 = vmatprep.subr.bf16.mxu1 %v4850_v38  ;;  %v3955_v22 = vcombine.low %v1737_v19, %v1747_v20  ;;  %v3929_v24 = vld [vmem:[%s5062_s6 + $0x54] sm:$0xf]  ;;  %v1761_v34 = vsel %vm5085_vm2, %v1756_v25, %v1760_v15  ;;  %v1818_v0 = vrot.slane %v1816_v56, 5  ;;  %v517_v8 = vld [vmem:[%s5062_s6 + $0x4] sm:$0xf]  ;;  %v544_v11 = vshrl.u32 %v516_v7, 16 }
  0x35   : > { %4516 = vmatprep.subr.bf16.mxu0 %v4851_v41  ;;  %4499 = vmatmul.mubr.bf16.gmra.mrb[4].mxu0 %v3954_v59  ;;  %v1765_v23 = vor.u32 %v1764_v16, %v1760_v15  ;;  %v1773_v28 = vshrl.u32 %v3929_v24, 16  ;;  %v1776_v30 = vshll.u32 %v3929_v24, 16  ;;  %v1794_v45 = vrot.slane %v1792_v36, 5  ;;  %v518_v9 = vld [vmem:[%s5062_s6 + $0x8] sm:$0x1] }
  0x36   : > { %4502 = vmatprep.mubr.bf16.mxu0 %v3955_v22  ;;  %v1803_v4 = vor.u32 %v1802_v61, %v1799_v60  ;;  %v547_v12 = vshll.u32 %v516_v7, 16  ;;  %v557_v16 = vshrl.u32 %v517_v8, 16  ;;  %v546_v21 = vrot.slane %v544_v11, 4  ;;  %v3969_v25 = vld [vmem:[%s5062_s6 + $0x14] sm:$0x1]  ;;  %v4866_v11 = vld [vmem:[%s5772_s1 + $0x88] sm:$0xff]  }
  0x37   : > { %4389 = vmatpush3.bf16.msra.mxu1 %v4850_v38  ;;  %v1766_v29 = vrot.slane %v1765_v23, 4  ;;  %v1775_v35 = vrot.slane %v1773_v28, 4  ;;  %v4860_v38 = vld [vmem:[%s5772_s1 + $0x70] sm:$0xff]   ;;  %v1778_v40 = vrot.slane %v1776_v30, 5  ;;  %v3971_v52 = vld [vmem:[%s5062_s6 + $0x1c] sm:$0xf] }
  0x38   : > { %4517 = vmatpush3.bf16.msra.mxu0 %v4851_v41  ;;  %4390 = vmatprep.subr.bf16.mxu1 %v4854_v58  ;;  %v1784_v41 = vrot.slane %v1782_v31, 5  ;;  %v1804_v10 = vrot.slane %v1803_v4, 4  ;;  %v549_v22 = vrot.slane %v547_v12, 5  ;;  %v559_v28 = vrot.slane %v557_v16, 4  ;;  %v519_v31 = vld [vmem:[%s5062_s6 + $0xc] sm:$0xf] }
  0x39   : > { %4518 = vmatprep.subr.bf16.mxu0 %v4855_v62  ;;  %v1771_v39 = vsel %vm5085_vm2, %v1766_v29, %v1770_v17  ;;  %v1779_v48 = vor.u32 %v1778_v40, %v1775_v35  ;;  %v563_v17 = vshll.u32 %v518_v9, 16  ;;  %v2115_v35 = vrot.slane %v3969_v25, 5  ;;  %v520_v36 = vld [vmem:[%s5062_s6 + $0x10] sm:$0xf]  ;;  %v522_v4 = vld [vmem:[%s5062_s6 + $0x18] sm:$0xf] }
  0x3a   : > { %4375 = vmatmul.mubr.bf16.gmra.mrb[8].mxu1 %v4853_v5  ;;  %v3956_v44 = vcombine.low %v1761_v34, %v1771_v39  ;;  %v1789_v49 = vor.u32 %v1788_v42, %v1784_v41  ;;  %v550_v34 = vor.u32 %v549_v22, %v546_v21  ;;  %v571_v42 = vshll.u32 %v519_v31, 16  ;;  %v524_v9 = vld [vmem:[%s5062_s6 + $0x20] sm:$0x1]  ;;  %v4867_v12 = vld [vmem:[%s5772_s1 + $0x188] sm:$0xff]   ;;  %v3973_v16 = vld [vmem:[%s5062_s6 + $0x24] sm:$0xe] }
  0x3b   : > { %4391 = vmatpush3.bf16.msra.mxu1 %v4854_v58  ;;  %4378 = vmatprep.mubr.bf16.mxu1 %v4858_v18  ;;  %v1780_v58 = vrot.slane %v1779_v48, 4  ;;  %v3968_v18 = vld [vmem:[%s5062_s6 + $0x10] sm:$0xf]  ;;  %v565_v29 = vrot.slane %v563_v17, 5  ;;  %v581_v46 = vshrl.u32 %v520_v36, 16 }
  0x3c   : > { %4519 = vmatpush3.bf16.msra.mxu0 %v4855_v62  ;;  %4392 = vmatprep.subr.bf16.mxu1 %v4856_v13  ;;  %v1790_v59 = vrot.slane %v1789_v49, 4  ;;  %v1808_v62 = vrot.slane %v1806_v54, 5  ;;  %v2112_v30 = vrot.slane %v3968_v18, 5  ;;  %v573_v50 = vrot.slane %v571_v42, 5  ;;  %v3974_v21 = vld [vmem:[%s5062_s6 + $0x28] sm:$0xf] }
  0x3d   : > { %4520 = vmatprep.subr.bf16.mxu0 %v4857_v14  ;;  %4503 = vmatmul.mubr.bf16.gmra.mrb[8].mxu0 %v3956_v44  ;;  %v1785_v2 = vsel %vm5085_vm2, %v1780_v58, %v1784_v41  ;;  %v583_v56 = vrot.slane %v581_v46, 4  ;;  %v3975_v22 = vld [vmem:[%s5062_s6 + $0x2c] sm:$0x1] }
  0x3e   : > { %v1795_v3 = vsel %vm5085_vm2, %v1790_v59, %v1794_v45  ;;  %v1813_v6 = vor.u32 %v1812_v63, %v1808_v62  ;;  %v1809_v20 = vsel %vm5085_vm2, %v1804_v10, %v1808_v62  ;;  %v2114_v41 = vrot.slane %v2112_v30, 4 }
  0x3f   : > { %4393 = vmatpush3.bf16.msra.mxu1 %v4856_v13  ;;  %v3957_v5 = vcombine.low %v1785_v2, %v1795_v3  ;;  %v553_v13 = vshll.u32 %v517_v8, 16  ;;  %v577_v45 = vshll.u32 %v520_v36, 16  ;;  %v523_v8 = vld [vmem:[%s5062_s6 + $0x1c] sm:$0xf]  ;;  %v527_v36 = vld [vmem:[%s5062_s6 + $0x2c] sm:$0x1] }
  0x40   : > { %4521 = vmatpush3.bf16.msra.mxu0 %v4857_v14  ;;  %4394 = vmatprep.subr.bf16.mxu1 %v4860_v38  ;;  %v3967_v14 = vld [vmem:[%s5062_s6 + $0xc] sm:$0xe]  ;;  %v1814_v15 = vrot.slane %v1813_v6, 4  ;;  %v2116_v49 = vsel %vm5207_vm5, %v2114_v41, %v2115_v35  ;;  %v3993_v35 = vrot.slane %v3973_v16, 9 }
  0x41   : > { %4522 = vmatprep.subr.bf16.mxu0 %v4861_v43  ;;  %4506 = vmatprep.mubr.bf16.mxu0 %v3957_v5  ;;  %v3991_v19 = vrot.slane %v3967_v14, 9  ;;  %v555_v23 = vrot.slane %v553_v13, 5  ;;  %v579_v55 = vrot.slane %v577_v45, 5  ;;  %v592_v13 = vshrl.u32 %v522_v4, 16  ;;  %v4868_v45 = vld [vmem:[%s5772_s1 + $0x90] sm:$0xff]  }
  0x42   : > { %4379 = vmatmul.mubr.bf16.gmra.mrb[12].mxu1 %v4859_v37  ;;  %v1819_v27 = vsel %vm5085_vm2, %v1814_v15, %v1818_v0  ;;  %v521_v37 = vld [vmem:[%s5062_s6 + $0x14] sm:$0x1]  ;;  %v2119_v0 = vrot.slane %v3971_v52, 5  ;;  %v595_v14 = vshll.u32 %v522_v4, 16  ;;  %v601_v15 = vshll.u32 %v523_v8, 16 }
  0x43   : > { %4395 = vmatpush3.bf16.msra.mxu1 %v4860_v38  ;;  %v3958_v32 = vcombine.low %v1809_v20, %v1819_v27  ;;  %v568_v38 = vshrl.u32 %v519_v31, 16  ;;  %v560_v39 = vor.u32 %v559_v28, %v555_v23  ;;  %v2113_v40 = vsel %vm5207_vm5, %v3991_v19, %v2112_v30  ;;  %v526_v30 = vld [vmem:[%s5062_s6 + $0x28] sm:$0xf] }
  0x44   : > { %4523 = vmatpush3.bf16.msra.mxu0 %v4861_v43  ;;  %4396 = vmatprep.subr.bf16.mxu1 %v4862_v47  ;;  %v551_v43 = vrot.slane %v550_v34, 4  ;;  %v587_v51 = vshll.u32 %v521_v37, 16  ;;  %v4015_v54 = vcombine.low %v2113_v40, %v2116_v49  ;;  %v584_v63 = vor.u32 %v583_v56, %v579_v55  ;;  %v3976_v49 = vld [vmem:[%s5062_s6 + $0x30] sm:$0xe] }
  0x45   : > { %4524 = vmatprep.subr.bf16.mxu0 %v4863_v57  ;;  %4507 = vmatmul.mubr.bf16.gmra.mrb[12].mxu0 %v3958_v32  ;;  %v570_v44 = vrot.slane %v568_v38, 4  ;;  %v561_v48 = vrot.slane %v560_v39, 4  ;;  %v2121_v7 = vrot.slane %v2119_v0, 4  ;;  %v605_v19 = vshrl.u32 %v523_v8, 16 }
  0x46   : > { %v556_v53 = vsel %vm5085_vm2, %v551_v43, %v555_v23  ;;  %v589_v60 = vrot.slane %v587_v51, 5  ;;  %4526 = vmatprep.mubr.bf16.mxu0 %v4015_v54  ;;  %v585_v5 = vrot.slane %v584_v63, 4  ;;  %v611_v20 = vshll.u32 %v524_v9, 16  ;;  %v3977_v54 = vld [vmem:[%s5062_s6 + $0x34] sm:$0xf] }
  0x47   : > { %4397 = vmatpush3.bf16.msra.mxu1 %v4862_v47  ;;  %v3970_v47 = vld [vmem:[%s5062_s6 + $0x18] sm:$0xe]  ;;  %v566_v58 = vsel %vm5085_vm2, %v561_v48, %v565_v29  ;;  %v574_v59 = vor.u32 %v573_v50, %v570_v44  ;;  %v594_v27 = vrot.slane %v592_v13, 4  ;;  %v597_v28 = vrot.slane %v595_v14, 5  ;;  %v525_v29 = vld [vmem:[%s5062_s6 + $0x24] sm:$0xf] }
  0x48   : > { %4525 = vmatpush3.bf16.msra.mxu0 %v4863_v57  ;;  %4414 = vmatprep.subr.bf16.mxu1 %v5192_v1  ;;  %v3972_v57 = vld [vmem:[%s5062_s6 + $0x20] sm:$0x1]  ;;  %v3992_v61 = vrot.slane %v3970_v47, 9  ;;  %v3805_v62 = vcombine.low %v556_v53, %v566_v58  ;;  %v590_v17 = vsel %vm5085_vm2, %v585_v5, %v589_v60  ;;  %v603_v31 = vrot.slane %v601_v15, 5  ;;  %v3978_v58 = vld [vmem:[%s5062_s6 + $0x38] sm:$0x1] }
  0x49   : > { %4542 = vmatprep.subr.bf16.mxu0 %v5216_v26  ;;  %v2122_v2 = vrot.slane %v3972_v57, 5  ;;  %v575_v3 = vrot.slane %v574_v59, 4  ;;  %v607_v32 = vrot.slane %v605_v19, 4  ;;  %v613_v34 = vrot.slane %v611_v20, 5  ;;  %v4870_v60 = vld [vmem:[%s5772_s1 + $0x98] sm:$0xff]   ;;  %v4873_v15 = vld [vmem:[%s5772_s1 + $0x1a0] sm:$0xff]  }
  0x4a   : > { %4398 = vmatprep.mubr.bf16.mxu1 %v3805_v62  ;;  %v2120_v6 = vsel %vm5207_vm5, %v3992_v61, %v2119_v0  ;;  %v598_v37 = vor.u32 %v597_v28, %v594_v27  ;;  %v2126_v38 = vrot.slane %v3974_v21, 5  ;;  %v2129_v39 = vrot.slane %v3975_v22, 5  ;;  %v530_v13 = vld [vmem:[%s5062_s6 + $0x38] sm:$0x1]  ;;  %v3979_v20 = vld [vmem:[%s5062_s6 + $0x3c] sm:$0xe] }
  0x4b   : > { %v580_v10 = vsel %vm5085_vm2, %v575_v3, %v579_v55  ;;  %v2123_v18 = vsel %vm5207_vm5, %v2121_v7, %v2122_v2  ;;  %v616_v40 = vshrl.u32 %v525_v29, 16  ;;  %v608_v41 = vor.u32 %v607_v32, %v603_v31  ;;  %v4871_v2 = vld [vmem:[%s5772_s1 + $0x198] sm:$0xff]   ;;  %v3980_v21 = vld [vmem:[%s5062_s6 + $0x40] sm:$0xf]  ;;  %v3981_v28 = vld [vmem:[%s5062_s6 + $0x44] sm:$0x1] }
  0x4c   : > { %v3806_v23 = vcombine.low %v580_v10, %v590_v17  ;;  %v4016_v25 = vcombine.low %v2120_v6, %v2123_v18  ;;  %v619_v42 = vshll.u32 %v525_v29, 16  ;;  %v625_v43 = vshll.u32 %v526_v30, 16  ;;  %v528_v10 = vld [vmem:[%s5062_s6 + $0x30] sm:$0xf]  ;;  %v531_v29 = vld [vmem:[%s5062_s6 + $0x3c] sm:$0xf] }
  0x4d   : > { %v629_v44 = vshrl.u32 %v526_v30, 16  ;;  %v599_v46 = vrot.slane %v598_v37, 4  ;;  %v2127_v47 = vsel %vm5207_vm5, %v3993_v35, %v2126_v38  ;;  %v2128_v48 = vrot.slane %v2126_v38, 4  ;;  %v532_v35 = vld [vmem:[%s5062_s6 + $0x40] sm:$0xf] }
  0x4e   : > { %4399 = vmatmul.mubr.bf16.vlgmr.msra.gmra.mrb[0].mxu1 %v3806_v23  ;;  %4527 = vmatmul.mubr.bf16.vlgmr.msra.gmra.mrb[0].mxu0 %v4016_v25  ;;  %v609_v50 = vrot.slane %v608_v41, 4  ;;  %v621_v51 = vrot.slane %v619_v42, 5  ;;  %v627_v52 = vrot.slane %v625_v43, 5  ;;  %v635_v57 = vshll.u32 %v527_v36, 16  ;;  %v4872_v36 = vld [vmem:[%s5772_s1 + $0xa0] sm:$0xff]  }
  0x4f   : > { %4415 = vmatpush3.bf16.msra.mxu1 %v5192_v1  ;;  %4543 = vmatpush3.bf16.msra.mxu0 %v5216_v26  ;;  %v618_v1 = vrot.slane %v616_v40, 4  ;;  %v4869_v26 = vld [vmem:[%s5772_s1 + $0x190] sm:$0xff]   ;;  %v631_v53 = vrot.slane %v629_v44, 4  ;;  %v604_v55 = vsel %vm5085_vm2, %v599_v46, %v603_v31  ;;  %v2130_v56 = vsel %vm5207_vm5, %v2128_v48, %v2129_v39  ;;  %v533_v41 = vld [vmem:[%s5062_s6 + $0x44] sm:$0x1]  ;;  %v4874_v46 = vld [vmem:[%s5772_s1 + $0xa8] sm:$0xff]  }
  0x50   : > { %4416 = vmatprep.subr.bf16.mxu1 %v4866_v11  ;;  %4544 = vmatprep.subr.bf16.mxu0 %v4867_v12  ;;  %v3994_v59 = vrot.slane %v3976_v49, 9  ;;  %v614_v61 = vsel %vm5085_vm2, %v609_v50, %v613_v34  ;;  %v4017_v62 = vcombine.low %v2127_v47, %v2130_v56  ;;  %v2133_v0 = vrot.slane %v3977_v54, 5  ;;  %v4875_v47 = vld [vmem:[%s5772_s1 + $0x1a8] sm:$0xff]  }
  0x51   : > { %v622_v63 = vor.u32 %v621_v51, %v618_v1  ;;  %v3807_v3 = vcombine.low %v604_v55, %v614_v61  ;;  %v632_v4 = vor.u32 %v631_v53, %v627_v52  ;;  %v637_v5 = vrot.slane %v635_v57, 5  ;;  %v3982_v50 = vld [vmem:[%s5062_s6 + $0x48] sm:$0xe]  ;;  %v3983_v55 = vld [vmem:[%s5062_s6 + $0x4c] sm:$0xf] }
  0x52   : > { %v2136_v6 = vrot.slane %v3978_v58, 5  ;;  %4530 = vmatprep.mubr.bf16.mxu0 %v4017_v62  ;;  %v2134_v8 = vsel %vm5207_vm5, %v3994_v59, %v2133_v0  ;;  %v2135_v9 = vrot.slane %v2133_v0, 4  ;;  %v640_v14 = vshrl.u32 %v528_v10, 16 }
  0x53   : > { %4417 = vmatpush3.bf16.msra.mxu1 %v4866_v11  ;;  %4545 = vmatpush3.bf16.msra.mxu0 %v4867_v12  ;;  %v623_v7 = vrot.slane %v622_v63, 4  ;;  %v633_v11 = vrot.slane %v632_v4, 4  ;;  %v529_v12 = vld [vmem:[%s5062_s6 + $0x34] sm:$0xf]  ;;  %v643_v18 = vshll.u32 %v528_v10, 16  ;;  %v659_v34 = vshll.u32 %v530_v13, 16 }
  0x54   : > { %4418 = vmatprep.subr.bf16.mxu1 %v4868_v45  ;;  %4546 = vmatprep.subr.bf16.mxu0 %v4869_v26  ;;  %v2137_v17 = vsel %vm5207_vm5, %v2135_v9, %v2136_v6  ;;  %v649_v19 = vshll.u32 %v529_v12, 16  ;;  %v642_v25 = vrot.slane %v640_v14, 4  ;;  %v653_v27 = vshrl.u32 %v529_v12, 16  ;;  %v534_v14 = vld [vmem:[%s5062_s6 + $0x48] sm:$0xf] }
  0x55   : > { %4402 = vmatprep.mubr.bf16.mxu1 %v3807_v3  ;;  %v628_v16 = vsel %vm5085_vm2, %v623_v7, %v627_v52  ;;  %v638_v22 = vsel %vm5085_vm2, %v633_v11, %v637_v5  ;;  %v4018_v23 = vcombine.low %v2134_v8, %v2137_v17  ;;  %v645_v31 = vrot.slane %v643_v18, 5  ;;  %v4877_v7 = vld [vmem:[%s5772_s1 + $0x1b0] sm:$0xff]   ;;  %v535_v17 = vld [vmem:[%s5062_s6 + $0x4c] sm:$0xf] }
  0x56   : > { %v3808_v30 = vcombine.low %v628_v16, %v638_v22  ;;  %v651_v32 = vrot.slane %v649_v19, 5  ;;  %v655_v37 = vrot.slane %v653_v27, 4  ;;  %v3995_v38 = vrot.slane %v3979_v20, 9  ;;  %v536_v18 = vld [vmem:[%s5062_s6 + $0x50] sm:$0x1]  ;;  %v4879_v27 = vld [vmem:[%s5772_s1 + $0x1b8] sm:$0xff]  }
  0x57   : > { %4419 = vmatpush3.bf16.msra.mxu1 %v4868_v45  ;;  %4547 = vmatpush3.bf16.msra.mxu0 %v4869_v26  ;;  %v2140_v39 = vrot.slane %v3980_v21, 5  ;;  %v2143_v40 = vrot.slane %v3981_v28, 5  ;;  %v646_v42 = vor.u32 %v645_v31, %v642_v25  ;;  %v661_v43 = vrot.slane %v659_v34, 5  ;;  %v3985_v25 = vld [vmem:[%s5062_s6 + $0x54] sm:$0xe] }
  0x58   : > { %4420 = vmatprep.subr.bf16.mxu1 %v4870_v60  ;;  %4548 = vmatprep.subr.bf16.mxu0 %v4871_v2  ;;  %v664_v44 = vshrl.u32 %v531_v29, 16  ;;  %v667_v45 = vshll.u32 %v531_v29, 16  ;;  %v656_v48 = vor.u32 %v655_v37, %v651_v32  ;;  %v673_v26 = vshll.u32 %v532_v35, 16  ;;  %v3987_v34 = vld [vmem:[%s5062_s6 + $0x5c] sm:$0x1] }
  0x59   : > { %4531 = vmatmul.mubr.bf16.gmra.mrb[4].mxu0 %v4018_v23  ;;  %4403 = vmatmul.mubr.bf16.gmra.mrb[4].mxu1 %v3808_v30  ;;  %v2141_v1 = vsel %vm5207_vm5, %v3995_v38, %v2140_v39  ;;  %v2142_v49 = vrot.slane %v2140_v39, 4  ;;  %v647_v51 = vrot.slane %v646_v42, 4  ;;  %v677_v54 = vshrl.u32 %v532_v35, 16  ;;  %v537_v39 = vld [vmem:[%s5062_s6 + $0x54] sm:$0xf] }
  0x5a   : > { %v666_v52 = vrot.slane %v664_v44, 4  ;;  %v669_v53 = vrot.slane %v667_v45, 5  ;;  %v657_v56 = vrot.slane %v656_v48, 4  ;;  %v675_v58 = vrot.slane %v673_v26, 5  ;;  %v538_v45 = vld [vmem:[%s5062_s6 + $0x58] sm:$0xf] }
  0x5b   : > { %4549 = vmatpush3.bf16.msra.mxu0 %v4871_v2  ;;  %4421 = vmatpush3.bf16.msra.mxu1 %v4870_v60  ;;  %v2144_v57 = vsel %vm5207_vm5, %v2142_v49, %v2143_v40  ;;  %v683_v59 = vshll.u32 %v533_v41, 16  ;;  %v3984_v60 = vld [vmem:[%s5062_s6 + $0x50] sm:$0x1]  ;;  %v652_v61 = vsel %vm5085_vm2, %v647_v51, %v651_v32  ;;  %v679_v0 = vrot.slane %v677_v54, 4  ;;  %v3986_v32 = vld [vmem:[%s5062_s6 + $0x58] sm:$0xf] }
  0x5c   : > { %4550 = vmatprep.subr.bf16.mxu0 %v4873_v15  ;;  %4422 = vmatprep.subr.bf16.mxu1 %v4872_v36  ;;  %v4019_v62 = vcombine.low %v2141_v1, %v2144_v57  ;;  %v670_v63 = vor.u32 %v669_v53, %v666_v52  ;;  %v4876_v2 = vld [vmem:[%s5772_s1 + $0xb0] sm:$0xff]   ;;  %v662_v3 = vsel %vm5085_vm2, %v657_v56, %v661_v43  ;;  %v3996_v5 = vrot.slane %v3982_v50, 9  ;;  %v4878_v40 = vld [vmem:[%s5772_s1 + $0xb8] sm:$0xff]   ;;  %v5357_v53 = vld [vmem:[%s5772_s1 + $0xc0] sm:$0xff]  }
  0x5d   : > { %v685_v4 = vrot.slane %v683_v59, 5  ;;  %v2147_v6 = vrot.slane %v3983_v55, 5  ;;  %v3809_v8 = vcombine.low %v652_v61, %v662_v3  ;;  %v680_v10 = vor.u32 %v679_v0, %v675_v58  ;;  %v539_v48 = vld [vmem:[%s5062_s6 + $0x5c] sm:$0x1]  ;;  %v5366_v0 = vld [vmem:[%s5772_s1 + $0x1c0] sm:$0xff]  }
  0x5e   : > { %4534 = vmatprep.mubr.bf16.mxu0 %v4019_v62  ;;  %v671_v9 = vrot.slane %v670_v63, 4  ;;  %v2150_v11 = vrot.slane %v3984_v60, 5  ;;  %v688_v19 = vshrl.u32 %v534_v14, 16  ;;  %v691_v21 = vshll.u32 %v534_v14, 16  ;;  %v3989_v63 = vld [vmem:[%s5062_s6 + $0x64] sm:$0xf] }
  0x5f   : > { %4551 = vmatpush3.bf16.msra.mxu0 %v4873_v15  ;;  %4423 = vmatpush3.bf16.msra.mxu1 %v4872_v36  ;;  %v2148_v12 = vsel %vm5207_vm5, %v3996_v5, %v2147_v6  ;;  %v2149_v13 = vrot.slane %v2147_v6, 4  ;;  %v681_v16 = vrot.slane %v680_v10, 4  ;;  %v697_v22 = vshll.u32 %v535_v17, 16  ;;  %v3990_v6 = vld [vmem:[%s5062_s6 + $0x68] sm:$0x1] }
  0x60   : > { %4552 = vmatprep.subr.bf16.mxu0 %v4875_v47  ;;  %4424 = vmatprep.subr.bf16.mxu1 %v4874_v46  ;;  %v676_v15 = vsel %vm5085_vm2, %v671_v9, %v675_v58  ;;  %v701_v23 = vshrl.u32 %v535_v17, 16  ;;  %v690_v30 = vrot.slane %v688_v19, 4  ;;  %v707_v31 = vshll.u32 %v536_v18, 16  ;;  %v3988_v58 = vld [vmem:[%s5062_s6 + $0x60] sm:$0xe] }
  0x61   : > { %4406 = vmatprep.mubr.bf16.mxu1 %v3809_v8  ;;  %v2151_v20 = vsel %vm5207_vm5, %v2149_v13, %v2150_v11  ;;  %v686_v28 = vsel %vm5085_vm2, %v681_v16, %v685_v4  ;;  %v693_v36 = vrot.slane %v691_v21, 5  ;;  %v699_v37 = vrot.slane %v697_v22, 5  ;;  %v978_v19 = vld [vmem:[%s5062_s6 + $0x4] sm:$0xf]  ;;  %v4880_v22 = vld [vmem:[%s5062_s6 + $0x18] sm:$0xff]  }
  0x62   : > { %v4020_v29 = vcombine.low %v2148_v12, %v2151_v20  ;;  %v3810_v35 = vcombine.low %v676_v15, %v686_v28  ;;  %v703_v38 = vrot.slane %v701_v23, 4  ;;  %v709_v41 = vrot.slane %v707_v31, 5  ;;  %v977_v15 = vld [vmem:[%s5062_s6] sm:$0xe]  ;;  %v979_v20 = vld [vmem:[%s5062_s6 + $0x8] sm:$0x1] }
  0x63   : > { %4553 = vmatpush3.bf16.msra.mxu0 %v4875_v47  ;;  %4425 = vmatpush3.bf16.msra.mxu1 %v4874_v46  ;;  %v3997_v42 = vrot.slane %v3985_v25, 9  ;;  %v2154_v43 = vrot.slane %v3986_v32, 5  ;;  %v2157_v44 = vrot.slane %v3987_v34, 5  ;;  %v694_v46 = vor.u32 %v693_v36, %v690_v30  ;;  %v980_v30 = vld [vmem:[%s5062_s6 + $0xc] sm:$0xe] }
  0x64   : > { %4554 = vmatprep.subr.bf16.mxu0 %v4877_v7  ;;  %4426 = vmatprep.subr.bf16.mxu1 %v4876_v2  ;;  %v704_v47 = vor.u32 %v703_v38, %v699_v37  ;;  %v712_v1 = vshrl.u32 %v537_v39, 16  ;;  %v715_v49 = vshll.u32 %v537_v39, 16  ;;  %v721_v51 = vshll.u32 %v538_v45, 16  ;;  %v981_v31 = vld [vmem:[%s5062_s6 + $0x10] sm:$0xf] }
  0x65   : > { %4535 = vmatmul.mubr.bf16.gmra.mrb[8].mxu0 %v4020_v29  ;;  %4407 = vmatmul.mubr.bf16.gmra.mrb[8].mxu1 %v3810_v35  ;;  %v2155_v26 = vsel %vm5207_vm5, %v3997_v42, %v2154_v43  ;;  %v2156_v50 = vrot.slane %v2154_v43, 4  ;;  %v725_v52 = vshrl.u32 %v538_v45, 16  ;;  %v695_v54 = vrot.slane %v694_v46, 4  ;;  %v982_v32 = vld [vmem:[%s5062_s6 + $0x14] sm:$0x1] }
  0x66   : > { %v705_v55 = vrot.slane %v704_v47, 4  ;;  %v714_v56 = vrot.slane %v712_v1, 4  ;;  %v717_v57 = vrot.slane %v715_v49, 5  ;;  %v723_v60 = vrot.slane %v721_v51, 5  ;;  %v983_v45 = vld [vmem:[%s5062_s6 + $0x18] sm:$0xe] }
  0x67   : > { %4555 = vmatpush3.bf16.msra.mxu0 %v4877_v7  ;;  %4427 = vmatpush3.bf16.msra.mxu1 %v4876_v2  ;;  %v2158_v59 = vsel %vm5207_vm5, %v2156_v50, %v2157_v44  ;;  %v727_v61 = vrot.slane %v725_v52, 4  ;;  %v731_v62 = vshll.u32 %v539_v48, 16  ;;  %v700_v2 = vsel %vm5085_vm2, %v695_v54, %v699_v37  ;;  %v4882_v44 = vld [vmem:[%s5062_s6 + $0x24] sm:$0xff]   ;;  %v984_v46 = vld [vmem:[%s5062_s6 + $0x1c] sm:$0xf] }
  0x68   : > { %4556 = vmatprep.subr.bf16.mxu0 %v4879_v27  ;;  %4428 = vmatprep.subr.bf16.mxu1 %v4878_v40  ;;  %v710_v3 = vsel %vm5085_vm2, %v705_v55, %v709_v41  ;;  %v4021_v4 = vcombine.low %v2155_v26, %v2158_v59  ;;  %v718_v5 = vor.u32 %v717_v57, %v714_v56  ;;  %v3998_v10 = vrot.slane %v3988_v58, 9  ;;  %v4884_v48 = vld [vmem:[%s5772_s1 + $0xc8] sm:$0xff]   ;;  %v985_v1 = vld [vmem:[%s5062_s6 + $0x20] sm:$0x1]  ;;  %v986_v54 = vld [vmem:[%s5062_s6 + $0x24] sm:$0xe] }
  0x69   : > { %v3811_v7 = vcombine.low %v700_v2, %v710_v3  ;;  %v728_v8 = vor.u32 %v727_v61, %v723_v60  ;;  %v733_v9 = vrot.slane %v731_v62, 5  ;;  %v2161_v12 = vrot.slane %v3989_v63, 5  ;;  %v4885_v51 = vld [vmem:[%s5772_s1 + $0x1c8] sm:$0xff]   ;;  %v4886_v63 = vld [vmem:[%s5062_s6 + $0x30] sm:$0xff]  }
  0x6a   : > { %4538 = vmatprep.mubr.bf16.mxu0 %v4021_v4  ;;  %v719_v11 = vrot.slane %v718_v5, 4  ;;  %v2164_v13 = vrot.slane %v3990_v6, 5  ;;  %v3821_v21 = vrot.slane %v977_v15, 9  ;;  %v1030_v25 = vrot.slane %v978_v19, 5  ;;  %v987_v57 = vld [vmem:[%s5062_s6 + $0x28] sm:$0xf] }
  0x6b   : > { %4557 = vmatpush3.bf16.msra.mxu0 %v4879_v27  ;;  %4429 = vmatpush3.bf16.msra.mxu1 %v4878_v40  ;;  %v729_v14 = vrot.slane %v728_v8, 4  ;;  %v2162_v17 = vsel %vm5207_vm5, %v3998_v10, %v2161_v12  ;;  %v2163_v18 = vrot.slane %v2161_v12, 4  ;;  %v1033_v27 = vrot.slane %v979_v20, 5  ;;  %v988_v58 = vld [vmem:[%s5062_s6 + $0x2c] sm:$0x1]  ;;  %v4887_v5 = vld [vmem:[%s5772_s1 + $0xd0] sm:$0xff]  }
  0x6c   : > { %4574 = vmatprep.subr.bf16.mxu0 %v5366_v0  ;;  %4446 = vmatprep.subr.bf16.mxu1 %v5357_v53  ;;  %v724_v16 = vsel %vm5085_vm2, %v719_v11, %v723_v60  ;;  %v1031_v35 = vsel %vm5207_vm5, %v3821_v21, %v1030_v25  ;;  %v1032_v36 = vrot.slane %v1030_v25, 4  ;;  %v3822_v37 = vrot.slane %v980_v30, 9  ;;  %v990_v10 = vld [vmem:[%s5062_s6 + $0x34] sm:$0xf]  ;;  %v991_v11 = vld [vmem:[%s5062_s6 + $0x38] sm:$0x1] }
  0x6d   : > { %4410 = vmatprep.mubr.bf16.mxu1 %v3811_v7  ;;  %v734_v23 = vsel %vm5085_vm2, %v729_v14, %v733_v9  ;;  %v2165_v29 = vsel %vm5207_vm5, %v2163_v18, %v2164_v13  ;;  %v1037_v38 = vrot.slane %v981_v31, 5  ;;  %v1040_v39 = vrot.slane %v982_v32, 5  ;;  %v4889_v7 = vld [vmem:[%s5772_s1 + $0x1d0] sm:$0xff]   ;;  %v4891_v12 = vld [vmem:[%s5772_s1 + $0x1d8] sm:$0xff]   ;;  %v4892_v20 = vld [vmem:[%s5062_s6 + $0x48] sm:$0xff]  }
  0x6e   : > { %v3812_v28 = vcombine.low %v724_v16, %v734_v23  ;;  %v4022_v34 = vcombine.low %v2162_v17, %v2165_v29  ;;  %v1034_v40 = vsel %vm5207_vm5, %v1032_v36, %v1033_v27  ;;  %v3823_v49 = vrot.slane %v983_v45, 9  ;;  %v989_v9 = vld [vmem:[%s5062_s6 + $0x30] sm:$0xe]  ;;  %v992_v16 = vld [vmem:[%s5062_s6 + $0x3c] sm:$0xe]  ;;  %v4893_v30 = vld [vmem:[%s5772_s1 + $0xe0] sm:$0xff]  }
  0x6f   : > { %v3845_v41 = vcombine.low %v1031_v35, %v1034_v40  ;;  %v1038_v42 = vsel %vm5207_vm5, %v3822_v37, %v1037_v38  ;;  %v1039_v43 = vrot.slane %v1037_v38, 4  ;;  %v1044_v26 = vrot.slane %v984_v46, 5  ;;  %v993_v17 = vld [vmem:[%s5062_s6 + $0x40] sm:$0xf]  ;;  %v994_v21 = vld [vmem:[%s5062_s6 + $0x44] sm:$0x1] }
  0x70   : > { %4411 = vmatmul.mubr.bf16.gmra.mrb[12].mxu1 %v3812_v28  ;;  %4539 = vmatmul.mubr.bf16.gmra.mrb[12].mxu0 %v4022_v34  ;;  %v1047_v52 = vrot.slane %v985_v1, 5  ;;  %v3824_v59 = vrot.slane %v986_v54, 9  ;;  %v1051_v60 = vrot.slane %v987_v57, 5  ;;  %v1054_v61 = vrot.slane %v988_v58, 5  ;;  %v4894_v34 = vld [vmem:[%s5062_s6 + $0x54] sm:$0xff]   ;;  %v4895_v35 = vld [vmem:[%s5772_s1 + $0x1e0] sm:$0xff]  }
  0x71   : > { %4558 = vmatprep.mubr.bf16.mxu0 %v4880_v22  ;;  %4430 = vmatprep.mubr.bf16.mxu1 %v3845_v41  ;;  %v1041_v47 = vsel %vm5207_vm5, %v1039_v43, %v1040_v39  ;;  %v1045_v55 = vsel %vm5207_vm5, %v3823_v49, %v1044_v26  ;;  %v1046_v56 = vrot.slane %v1044_v26, 4  ;;  %v3825_v13 = vrot.slane %v989_v9, 9  ;;  %v4896_v37 = vld [vmem:[%s5772_s1 + $0xe8] sm:$0xff]   ;;  %v997_v41 = vld [vmem:[%s5062_s6 + $0x50] sm:$0x1]  ;;  %v4898_v43 = vld [vmem:[%s5062_s6 + $0x60] sm:$0xff]  }
  0x72   : > { %v3846_v50 = vcombine.low %v1038_v42, %v1041_v47  ;;  %v1052_v3 = vsel %vm5207_vm5, %v3824_v59, %v1051_v60  ;;  %v1053_v4 = vrot.slane %v1051_v60, 4  ;;  %v1058_v14 = vrot.slane %v990_v10, 5  ;;  %v995_v38 = vld [vmem:[%s5062_s6 + $0x48] sm:$0xe]  ;;  %v996_v40 = vld [vmem:[%s5062_s6 + $0x4c] sm:$0xf] }
  0x73   : > { %v1048_v62 = vsel %vm5207_vm5, %v1046_v56, %v1047_v52  ;;  %v1061_v15 = vrot.slane %v991_v11, 5  ;;  %v3826_v22 = vrot.slane %v992_v16, 9  ;;  %v1065_v23 = vrot.slane %v993_v17, 5  ;;  %v4897_v39 = vld [vmem:[%s5772_s1 + $0x1e8] sm:$0xff]   ;;  %v998_v46 = vld [vmem:[%s5062_s6 + $0x54] sm:$0xe] }
  0x74   : > { %v3847_v2 = vcombine.low %v1045_v55, %v1048_v62  ;;  %v1055_v6 = vsel %vm5207_vm5, %v1053_v4, %v1054_v61  ;;  %v1059_v18 = vsel %vm5207_vm5, %v3825_v13, %v1058_v14  ;;  %v1060_v19 = vrot.slane %v1058_v14, 4  ;;  %v999_v47 = vld [vmem:[%s5062_s6 + $0x58] sm:$0xf]  ;;  %v4899_v52 = vld [vmem:[%s5772_s1 + $0xf0] sm:$0xff]   ;;  %v4082_v4 = vld [vmem:[%s5062_s6 + $0x1c] sm:$0xf] }
  0x75   : > { %v3848_v8 = vcombine.low %v1052_v3, %v1055_v6  ;;  %v1068_v25 = vrot.slane %v994_v21, 5  ;;  %v1066_v28 = vsel %vm5207_vm5, %v3826_v22, %v1065_v23  ;;  %v1067_v29 = vrot.slane %v1065_v23, 4  ;;  %v4901_v57 = vld [vmem:[%s5772_s1 + $0x1f0] sm:$0xff]   ;;  %v4902_v61 = vld [vmem:[%s5772_s1 + $0xf8] sm:$0xff]   ;;  %v4084_v13 = vld [vmem:[%s5062_s6 + $0x24] sm:$0xf] }
  0x76   : > { %v1062_v27 = vsel %vm5207_vm5, %v1060_v19, %v1061_v15  ;;  %v3827_v42 = vrot.slane %v995_v38, 9  ;;  %v1075_v45 = vrot.slane %v997_v41, 5  ;;  %v3828_v26 = vrot.slane %v998_v46, 9  ;;  %v4900_v59 = vld [vmem:[%s5062_s6 + $0x6c] sm:$0xff]   ;;  %v4081_v3 = vld [vmem:[%s5062_s6 + $0x18] sm:$0xf] }
  0x77   : > { %v3849_v31 = vcombine.low %v1059_v18, %v1062_v27  ;;  %v1069_v32 = vsel %vm5207_vm5, %v1067_v29, %v1068_v25  ;;  %v2711_v6 = vshrl.u32 %v4081_v3, 16  ;;  %v4905_v15 = vld [vmem:[%s5062_s6 + $0x18] sm:$0xff]   ;;  %v4085_v16 = vld [vmem:[%s5062_s6 + $0x28] sm:$0xf]  ;;  %v4086_v17 = vld [vmem:[%s5062_s6 + $0x2c] sm:$0x1] }
  0x78   : > { %4431 = vmatmul.mubr.bf16.vlgmr.msra.gmra.mrb[0].mxu1 %v3846_v50  ;;  %4559 = vmatmul.mubr.bf16.vlgmr.msra.gmra.mrb[0].mxu0 %v4882_v44  ;;  %v3850_v36 = vcombine.low %v1066_v28, %v1069_v32  ;;  %v1072_v44 = vrot.slane %v996_v40, 5  ;;  %v1079_v50 = vrot.slane %v999_v47, 5  ;;  %v2735_v18 = vshrl.u32 %v4084_v13, 16  ;;  %v4906_v28 = vld [vmem:[%s5772_s1 + $0x200] sm:$0xff]   ;;  %v4087_v41 = vld [vmem:[%s5062_s6 + $0x30] sm:$0xf] }
  0x79   : > { %4447 = vmatpush3.bf16.msra.mxu1 %v5357_v53  ;;  %4575 = vmatpush3.bf16.msra.mxu0 %v5366_v0  ;;  %v4888_v53 = vld [vmem:[%s5062_s6 + $0x3c] sm:$0xff]   ;;  %v2713_v9 = vrot.slane %v2711_v6, 4  ;;  %v2738_v21 = vshll.u32 %v4084_v13, 16  ;;  %v2744_v22 = vshll.u32 %v4085_v16, 16  ;;  %v2748_v25 = vshrl.u32 %v4085_v16, 16 }
  0x7a   : > { %4448 = vmatprep.subr.bf16.mxu1 %v4884_v48  ;;  %4576 = vmatprep.subr.bf16.mxu0 %v4885_v51  ;;  %v4890_v0 = vld [vmem:[%s5772_s1 + $0xd8] sm:$0xff]   ;;  %v1073_v1 = vsel %vm5207_vm5, %v3827_v42, %v1072_v44  ;;  %v1074_v49 = vrot.slane %v1072_v44, 4  ;;  %v1080_v55 = vsel %vm5207_vm5, %v3828_v26, %v1079_v50  ;;  %v1081_v56 = vrot.slane %v1079_v50, 4  ;;  %v4088_v42 = vld [vmem:[%s5062_s6 + $0x34] sm:$0xf] }
  0x7b   : > { %4434 = vmatprep.mubr.bf16.mxu1 %v3847_v2  ;;  %4562 = vmatprep.mubr.bf16.mxu0 %v4886_v63  ;;  %v4903_v63 = vld [vmem:[%s5772_s1 + $0x1f8] sm:$0xff]   ;;  %v4904_v2 = vld [vmem:[%s5062_s6 + $0xc] sm:$0xff]   ;;  %v2737_v23 = vrot.slane %v2735_v18, 4  ;;  %v2754_v27 = vshll.u32 %v4086_v17, 16  ;;  %v2746_v32 = vrot.slane %v2744_v22, 5  ;;  %v2759_v46 = vshrl.u32 %v4087_v41, 16 }
  0x7c   : > { %v1076_v54 = vsel %vm5207_vm5, %v1074_v49, %v1075_v45  ;;  %v4089_v45 = vld [vmem:[%s5062_s6 + $0x38] sm:$0x1]  ;;  %v2762_v47 = vshll.u32 %v4087_v41, 16  ;;  %v2772_v49 = vshrl.u32 %v4088_v42, 16  ;;  %v4912_v18 = vld [vmem:[%s5062_s6 + $0x3c] sm:$0xff]  }
  0x7d   : > { %4449 = vmatpush3.bf16.msra.mxu1 %v4884_v48  ;;  %4577 = vmatpush3.bf16.msra.mxu0 %v4885_v51  ;;  %v1000_v48 = vld [vmem:[%s5062_s6 + $0x5c] sm:$0x1]  ;;  %v3851_v58 = vcombine.low %v1073_v1, %v1076_v54  ;;  %v2768_v1 = vshll.u32 %v4088_v42, 16  ;;  %v2778_v26 = vshll.u32 %v4089_v45, 16  ;;  %v4909_v54 = vld [vmem:[%s5062_s6 + $0x30] sm:$0xff]  }
  0x7e   : > { %4450 = vmatprep.subr.bf16.mxu1 %v4887_v5  ;;  %4578 = vmatprep.subr.bf16.mxu0 %v4889_v7  ;;  %v1082_v51 = vrot.slane %v1000_v48, 5  ;;  %v4094_v22 = vld [vmem:[%s5062_s6 + $0x4c] sm:$0xf]  ;;  %v4096_v42 = vld [vmem:[%s5062_s6 + $0x54] sm:$0xf] }
  0x80   : > { %4435 = vmatmul.mubr.bf16.gmra.mrb[4].mxu1 %v3848_v8  ;;  %4563 = vmatmul.mubr.bf16.gmra.mrb[4].mxu0 %v4888_v53  ;;  %v1083_v60 = vsel %vm5207_vm5, %v1081_v56, %v1082_v51  ;;  %v2714_v53 = vshll.u32 %v4081_v3, 16  ;;  %v2724_v8 = vshrl.u32 %v4082_v4, 16  ;;  %v2761_v51 = vrot.slane %v2759_v46, 4 }
  0x81   : > { %4451 = vmatpush3.bf16.msra.mxu1 %v4887_v5  ;;  %4579 = vmatpush3.bf16.msra.mxu0 %v4889_v7  ;;  %v3852_v62 = vcombine.low %v1080_v55, %v1083_v60  ;;  %v4083_v5 = vld [vmem:[%s5062_s6 + $0x20] sm:$0x1]  ;;  %v2720_v7 = vshll.u32 %v4082_v4, 16  ;;  %v4090_v55 = vld [vmem:[%s5062_s6 + $0x3c] sm:$0xf] }
  0x82   : > { %4452 = vmatprep.subr.bf16.mxu1 %v4890_v0  ;;  %4580 = vmatprep.subr.bf16.mxu0 %v4891_v12  ;;  %v2716_v10 = vrot.slane %v2714_v53, 5  ;;  %v4091_v60 = vld [vmem:[%s5062_s6 + $0x40] sm:$0xf]  ;;  %v2783_v3 = vshrl.u32 %v4090_v55, 16  ;;  %v2786_v4 = vshll.u32 %v4090_v55, 16 }
  0x83   : > { %4566 = vmatprep.mubr.bf16.mxu0 %v4892_v20  ;;  %4438 = vmatprep.mubr.bf16.mxu1 %v3849_v31  ;;  %v2722_v11 = vrot.slane %v2720_v7, 5  ;;  %v2740_v31 = vrot.slane %v2738_v21, 5  ;;  %v2792_v53 = vshll.u32 %v4091_v60, 16  ;;  %v2796_v7 = vshrl.u32 %v4091_v60, 16  ;;  %v4916_v60 = vld [vmem:[%s5062_s6 + $0x54] sm:$0xff]  }
  0x84   : > { %v2717_v19 = vor.u32 %v2716_v10, %v2713_v9  ;;  %v2788_v9 = vrot.slane %v2786_v4, 5 }
  0x85   : > { %4453 = vmatpush3.bf16.msra.mxu1 %v4890_v0  ;;  %4581 = vmatpush3.bf16.msra.mxu0 %v4891_v12  ;;  %v2730_v0 = vshll.u32 %v4083_v5, 16  ;;  %v2726_v12 = vrot.slane %v2724_v8, 4  ;;  %v2741_v40 = vor.u32 %v2740_v31, %v2737_v23  ;;  %v2798_v13 = vrot.slane %v2796_v7, 4  ;;  %v4095_v23 = vld [vmem:[%s5062_s6 + $0x50] sm:$0x1] }
  0x86   : > { %4454 = vmatprep.subr.bf16.mxu1 %v4893_v30  ;;  %4582 = vmatprep.subr.bf16.mxu0 %v4895_v35  ;;  %v2718_v29 = vrot.slane %v2717_v19, 4  ;;  %v4093_v19 = vld [vmem:[%s5062_s6 + $0x48] sm:$0xf]  ;;  %v2820_v31 = vshrl.u32 %v4094_v22, 16 }
  0x87   : > { %v2732_v14 = vrot.slane %v2730_v0, 5  ;;  %v2727_v20 = vor.u32 %v2726_v12, %v2722_v11  ;;  %v2742_v48 = vrot.slane %v2741_v40, 4  ;;  %v2785_v0 = vrot.slane %v2783_v3, 4 }
  0x88   : > { %4439 = vmatmul.mubr.bf16.gmra.mrb[8].mxu1 %v3850_v36  ;;  %4567 = vmatmul.mubr.bf16.gmra.mrb[8].mxu0 %v4894_v34  ;;  %v2750_v34 = vrot.slane %v2748_v25, 4  ;;  %v5505_v36 = vld [vmem:[%s5772_s1 + $0x208] sm:$0xff]   ;;  %v2723_v38 = vsel %vm5085_vm2, %v2718_v29, %v2722_v11  ;;  %v2794_v12 = vrot.slane %v2792_v53, 5  ;;  %v2807_v25 = vshrl.u32 %v4093_v19, 16 }
  0x89   : > { %4455 = vmatpush3.bf16.msra.mxu1 %v4893_v30  ;;  %4583 = vmatpush3.bf16.msra.mxu0 %v4895_v35  ;;  %v2728_v30 = vrot.slane %v2727_v20, 4  ;;  %v2756_v35 = vrot.slane %v2754_v27, 5  ;;  %v2747_v56 = vsel %vm5085_vm2, %v2742_v48, %v2746_v32  ;;  %v2789_v16 = vor.u32 %v2788_v9, %v2785_v0  ;;  %v4101_v53 = vld [vmem:[%s5062_s6 + $0x68] sm:$0x1] }
  0x8a   : > { %4456 = vmatprep.subr.bf16.mxu1 %v4896_v37  ;;  %4584 = vmatprep.subr.bf16.mxu0 %v4897_v39  ;;  %v2751_v44 = vor.u32 %v2750_v34, %v2746_v32  ;;  %v2799_v21 = vor.u32 %v2798_v13, %v2794_v12  ;;  %v2810_v27 = vshll.u32 %v4093_v19, 16  ;;  %v4913_v32 = vld [vmem:[%s5062_s6 + $0x48] sm:$0xff]   ;;  %v2822_v41 = vrot.slane %v2820_v31, 4  ;;  %v4917_v13 = vld [vmem:[%s5062_s6 + $0x60] sm:$0xff]  }
  0x8b   : > { %4570 = vmatprep.mubr.bf16.mxu0 %v4898_v43  ;;  %4442 = vmatprep.mubr.bf16.mxu1 %v3851_v58  ;;  %v2774_v58 = vrot.slane %v2772_v49, 4  ;;  %v2790_v29 = vrot.slane %v2789_v16, 4  ;;  %v2831_v48 = vshrl.u32 %v4096_v42, 16  ;;  %v2834_v49 = vshll.u32 %v4096_v42, 16  ;;  %v4102_v19 = vld [vmem:[%s5062_s6 + $0x6c] sm:$0xf] }
  0x8c   : > { %v2752_v50 = vrot.slane %v2751_v44, 4  ;;  %v2800_v34 = vrot.slane %v2799_v21, 4  ;;  %v2882_v31 = vshll.u32 %v4102_v19, 16 }
  0x8d   : > { %4457 = vmatpush3.bf16.msra.mxu1 %v4896_v37  ;;  %4585 = vmatpush3.bf16.msra.mxu0 %v4897_v39  ;;  %v4908_v37 = vld [vmem:[%s5062_s6 + $0x24] sm:$0xff]   ;;  %v2733_v39 = vsel %vm5085_vm2, %v2728_v30, %v2732_v14  ;;  %v5534_v14 = vld [vmem:[%s5772_s1 + $0x218] sm:$0xff]   ;;  %v2816_v30 = vshll.u32 %v4094_v22, 16 }
  0x8e   : > { %4458 = vmatprep.subr.bf16.mxu1 %v4899_v52  ;;  %4586 = vmatprep.subr.bf16.mxu0 %v4901_v57  ;;  %v4121_v43 = vcombine.low %v2723_v38, %v2733_v39  ;;  %v2826_v38 = vshll.u32 %v4095_v23, 16  ;;  %v2795_v39 = vsel %vm5085_vm2, %v2790_v29, %v2794_v12  ;;  %v2874_v12 = vshll.u32 %v4101_v53, 16  ;;  %v4104_v29 = vld [vmem:[%s5062_s6 + $0x74] sm:$0x1] }
  0x8f   : > { %v2818_v40 = vrot.slane %v2816_v30, 5  ;;  %v2879_v30 = vshrl.u32 %v4102_v19, 16  ;;  %v4154_v19 = vld [vmem:[%s5062_s6 + $0x5c] sm:$0x1] }
  0x90   : > { %4443 = vmatmul.mubr.bf16.gmra.mrb[12].mxu1 %v3852_v62  ;;  %4571 = vmatmul.mubr.bf16.gmra.mrb[12].mxu0 %v4900_v59  ;;  %v2780_v59 = vrot.slane %v2778_v26, 5  ;;  %v2757_v62 = vsel %vm5085_vm2, %v2752_v50, %v2756_v35  ;;  %v2809_v35 = vrot.slane %v2807_v25, 4  ;;  %v2828_v46 = vrot.slane %v2826_v38, 5  ;;  %v4914_v50 = vld [vmem:[%s5772_s1 + $0x220] sm:$0xff]   ;;  %v4103_v25 = vld [vmem:[%s5062_s6 + $0x70] sm:$0xf] }
  0x91   : > { %4459 = vmatpush3.bf16.msra.mxu1 %v4899_v52  ;;  %4587 = vmatpush3.bf16.msra.mxu0 %v4901_v57  ;;  %v2764_v52 = vrot.slane %v2762_v47, 5  ;;  %v2770_v57 = vrot.slane %v2768_v1, 5  ;;  %v4122_v5 = vcombine.low %v2747_v56, %v2757_v62  ;;  %v4098_v47 = vld [vmem:[%s5062_s6 + $0x5c] sm:$0x1]  ;;  %v2823_v1 = vor.u32 %v2822_v41, %v2818_v40 }
  0x92   : > { %4460 = vmatprep.subr.bf16.mxu1 %v4902_v61  ;;  %4588 = vmatprep.subr.bf16.mxu0 %v4903_v63  ;;  %v2850_v56 = vshll.u32 %v4098_v47, 16  ;;  %v2876_v23 = vrot.slane %v2874_v12, 5  ;;  %v2898_v41 = vshll.u32 %v4104_v29, 16  ;;  %v4152_v12 = vld [vmem:[%s5062_s6 + $0x54] sm:$0xe] }
  0x93   : > { %4462 = vmatprep.mubr.bf16.mxu1 %v4904_v2  ;;  %4590 = vmatprep.mubr.bf16.mxu0 %v4121_v43  ;;  %v4092_v2 = vld [vmem:[%s5062_s6 + $0x44] sm:$0x1]  ;;  %v2775_v6 = vor.u32 %v2774_v58, %v2770_v57  ;;  %v4097_v43 = vld [vmem:[%s5062_s6 + $0x58] sm:$0xf]  ;;  %v2836_v58 = vrot.slane %v2834_v49, 5  ;;  %v4166_v33 = vrot.slane %v4152_v12, 9 }
  0x94   : > { %v2802_v10 = vshll.u32 %v4092_v2, 16  ;;  %v2840_v26 = vshll.u32 %v4097_v43, 16  ;;  %v2844_v55 = vshrl.u32 %v4097_v43, 16  ;;  %v2852_v2 = vrot.slane %v2850_v56, 5  ;;  %v4150_v56 = vld [vmem:[%s5062_s6 + $0x4c] sm:$0xf] }
  0x95   : > { %4461 = vmatpush3.bf16.msra.mxu1 %v4902_v61  ;;  %4589 = vmatpush3.bf16.msra.mxu0 %v4903_v63  ;;  %v5524_v61 = vld [vmem:[%s5772_s1 + $0x210] sm:$0xff]   ;;  %v2765_v63 = vor.u32 %v2764_v52, %v2761_v51  ;;  %v2776_v11 = vrot.slane %v2775_v6, 4  ;;  %v5564_v51 = vld [vmem:[%s5772_s1 + $0x228] sm:$0xff]   ;;  %v4100_v6 = vld [vmem:[%s5062_s6 + $0x64] sm:$0xf] }
  0x96   : > { %4638 = vmatprep.subr.bf16.mxu1 %v4906_v28  ;;  %4606 = vmatprep.subr.bf16.mxu0 %v4906_v28  ;;  %v2804_v17 = vrot.slane %v2802_v10, 5  ;;  %v2864_v10 = vshll.u32 %v4100_v6, 16 }
  0x97   : > { %v2766_v8 = vrot.slane %v2765_v63, 4  ;;  %v2781_v20 = vsel %vm5085_vm2, %v2776_v11, %v2780_v59  ;;  %v2842_v59 = vrot.slane %v2840_v26, 5  ;;  %v2846_v63 = vrot.slane %v2844_v55, 4  ;;  %v4149_v55 = vld [vmem:[%s5062_s6 + $0x48] sm:$0xe] }
  0x98   : > { %4463 = vmatmul.mubr.bf16.vlgmr.msra.gmra.mrb[0].mxu1 %v4905_v15  ;;  %4591 = vmatmul.mubr.bf16.vlgmr.msra.gmra.mrb[0].mxu0 %v4122_v5  ;;  %v2805_v44 = vsel %vm5085_vm2, %v2800_v34, %v2804_v17  ;;  %v4099_v5 = vld [vmem:[%s5062_s6 + $0x60] sm:$0xf]  ;;  %v2868_v11 = vshrl.u32 %v4100_v6, 16  ;;  %v2866_v21 = vrot.slane %v2864_v10, 5 }
  0x99   : > { %4646 = vmatpush3.bf16.msra.mxu1 %v4906_v28  ;;  %4466 = vmatprep.mubr.bf16.mxu1 %v4908_v37  ;;  %v2771_v15 = vsel %vm5085_vm2, %v2766_v8, %v2770_v57  ;;  %v2812_v37 = vrot.slane %v2810_v27, 5  ;;  %v2824_v57 = vrot.slane %v2823_v1, 4  ;;  %v2847_v8 = vor.u32 %v2846_v63, %v2842_v59  ;;  %v4139_v1 = vld [vmem:[%s5062_s6 + $0x20] sm:$0x1] }
  0x9a   : > { %4639 = vmatprep.subr.bf16.mxu1 %v5505_v36  ;;  %4607 = vmatpush3.bf16.msra.mxu0 %v4906_v28  ;;  %v4123_v28 = vcombine.low %v2771_v15, %v2781_v20  ;;  %v2858_v0 = vshll.u32 %v4099_v5, 16  ;;  %v5581_v15 = vld [vmem:[%s5772_s1 + $0x230] sm:$0xff]   ;;  %v2870_v22 = vrot.slane %v2868_v11, 4 }
  0x9b   : > { %4608 = vmatprep.subr.bf16.mxu0 %v5505_v36  ;;  %v2813_v45 = vor.u32 %v2812_v37, %v2809_v35  ;;  %v2829_v3 = vsel %vm5085_vm2, %v2824_v57, %v2828_v46  ;;  %v2848_v16 = vrot.slane %v2847_v8, 4  ;;  %v2888_v35 = vshll.u32 %v4103_v25, 16  ;;  %v4142_v8 = vld [vmem:[%s5062_s6 + $0x2c] sm:$0x1] }
  0x9c   : > { %4594 = vmatprep.mubr.bf16.mxu0 %v4123_v28  ;;  %v2871_v34 = vor.u32 %v2870_v22, %v2866_v21  ;;  %v2892_v37 = vshrl.u32 %v4103_v25, 16  ;;  %v3204_v11 = vrot.slane %v4142_v8, 5 }
  0x9d   : > { %4647 = vmatpush3.bf16.msra.mxu1 %v5505_v36  ;;  %v2814_v52 = vrot.slane %v2813_v45, 4  ;;  %v2853_v27 = vsel %vm5085_vm2, %v2848_v16, %v2852_v2  ;;  %v2890_v43 = vrot.slane %v2888_v35, 5  ;;  %v4137_v45 = vld [vmem:[%s5062_s6 + $0x18] sm:$0xe] }
  0x9e   : > { %4640 = vmatprep.subr.bf16.mxu1 %v5524_v61  ;;  %4609 = vmatpush3.bf16.msra.mxu0 %v5505_v36  ;;  %v4124_v36 = vcombine.low %v2795_v39, %v2805_v44  ;;  %v2881_v39 = vrot.slane %v2879_v30, 4  ;;  %v2872_v42 = vrot.slane %v2871_v34, 4  ;;  %v2894_v44 = vrot.slane %v2892_v37, 4 }
  0x9f   : > { %4610 = vmatprep.subr.bf16.mxu0 %v5524_v61  ;;  %v2819_v62 = vsel %vm5085_vm2, %v2814_v52, %v2818_v40  ;;  %v2884_v40 = vrot.slane %v2882_v31, 5  ;;  %v4161_v49 = vrot.slane %v4137_v45, 9  ;;  %v4147_v45 = vld [vmem:[%s5062_s6 + $0x40] sm:$0xf] }
  0xa0   : > { %4467 = vmatmul.mubr.bf16.gmra.mrb[4].mxu1 %v4909_v54  ;;  %v2833_v54 = vrot.slane %v2831_v48, 4  ;;  %4595 = vmatmul.mubr.bf16.gmra.mrb[4].mxu0 %v4124_v36  ;;  %v4125_v7 = vcombine.low %v2819_v62, %v2829_v3  ;;  %v2900_v48 = vrot.slane %v2898_v41, 5  ;;  %v4138_v36 = vld [vmem:[%s5062_s6 + $0x1c] sm:$0xf]  ;;  %v2877_v26 = vsel %vm5085_vm2, %v2872_v42, %v2876_v23 }
  0xa1   : > { %4648 = vmatpush3.bf16.msra.mxu1 %v5524_v61  ;;  %4470 = vmatprep.mubr.bf16.mxu1 %v4912_v18  ;;  %v2860_v18 = vrot.slane %v2858_v0, 5  ;;  %v2885_v47 = vor.u32 %v2884_v40, %v2881_v39  ;;  %v3194_v52 = vrot.slane %v4138_v36, 5  ;;  %v3222_v62 = vrot.slane %v4150_v56, 5  ;;  %v4157_v39 = vld [vmem:[%s5062_s6 + $0x68] sm:$0x1] }
  0xa2   : > { %4641 = vmatprep.subr.bf16.mxu1 %v5534_v14  ;;  %4611 = vmatpush3.bf16.msra.mxu0 %v5524_v61  ;;  %v2837_v4 = vor.u32 %v2836_v58, %v2833_v54  ;;  %v2855_v61 = vshrl.u32 %v4099_v5, 16  ;;  %v3197_v54 = vrot.slane %v4139_v1, 5  ;;  %v4140_v5 = vld [vmem:[%s5062_s6 + $0x24] sm:$0xe]  ;;  %v4148_v36 = vld [vmem:[%s5062_s6 + $0x44] sm:$0x1] }
  0xa3   : > { %4612 = vmatprep.subr.bf16.mxu0 %v5534_v14  ;;  %4598 = vmatprep.mubr.bf16.mxu0 %v4125_v7  ;;  %v2886_v58 = vrot.slane %v2885_v47, 4  ;;  %v3195_v2 = vsel %vm5207_vm5, %v4161_v49, %v3194_v52  ;;  %v3196_v3 = vrot.slane %v3194_v52, 4  ;;  %v3224_v53 = vrot.slane %v3222_v62, 4  ;;  %v4141_v7 = vld [vmem:[%s5062_s6 + $0x28] sm:$0xf] }
  0xa4   : > { %v2838_v9 = vrot.slane %v2837_v4, 4  ;;  %v2857_v17 = vrot.slane %v2855_v61, 4  ;;  %v4162_v61 = vrot.slane %v4140_v5, 9  ;;  %v3201_v10 = vrot.slane %v4141_v7, 5  ;;  %v4158_v52 = vld [vmem:[%s5062_s6 + $0x6c] sm:$0xe] }
  0xa5   : > { %4649 = vmatpush3.bf16.msra.mxu1 %v5534_v14  ;;  %v3215_v1 = vrot.slane %v4147_v45, 5 }
  0xa6   : > { %4642 = vmatprep.subr.bf16.mxu1 %v4914_v50  ;;  %4613 = vmatpush3.bf16.msra.mxu0 %v5534_v14  ;;  %v2843_v20 = vsel %vm5085_vm2, %v2838_v9, %v2842_v59  ;;  %v5592_v14 = vld [vmem:[%s5772_s1 + $0x238] sm:$0xff]   ;;  %v2861_v28 = vor.u32 %v2860_v18, %v2857_v17  ;;  %v4151_v59 = vld [vmem:[%s5062_s6 + $0x50] sm:$0x1]  ;;  %v3198_v9 = vsel %vm5207_vm5, %v3196_v3, %v3197_v54  ;;  %v3203_v23 = vrot.slane %v3201_v10, 4 }
  0xa7   : > { %4614 = vmatprep.subr.bf16.mxu0 %v4914_v50  ;;  %v3225_v4 = vrot.slane %v4151_v59, 5  ;;  %v4185_v17 = vcombine.low %v3195_v2, %v3198_v9  ;;  %v3202_v22 = vsel %vm5207_vm5, %v4162_v61, %v3201_v10  ;;  %v4159_v54 = vld [vmem:[%s5062_s6 + $0x70] sm:$0xf]  ;;  %v4160_v59 = vld [vmem:[%s5062_s6 + $0x74] sm:$0x1] }
  0xa8   : > { %4471 = vmatmul.mubr.bf16.gmra.mrb[8].mxu1 %v4913_v32  ;;  %v4126_v32 = vcombine.low %v2843_v20, %v2853_v27  ;;  %v2862_v38 = vrot.slane %v2861_v28, 4  ;;  %v4143_v20 = vld [vmem:[%s5062_s6 + $0x30] sm:$0xe]  ;;  %v4144_v27 = vld [vmem:[%s5062_s6 + $0x34] sm:$0xf]  ;;  %v3232_v28 = vrot.slane %v4154_v19, 5  ;;  %v3205_v34 = vsel %vm5207_vm5, %v3203_v23, %v3204_v11 }
  0xa9   : > { %4650 = vmatpush3.bf16.msra.mxu1 %v4914_v50  ;;  %4474 = vmatprep.mubr.bf16.mxu1 %v4916_v60  ;;  %v4165_v60 = vrot.slane %v4149_v55, 9  ;;  %v3226_v18 = vsel %vm5207_vm5, %v3224_v53, %v3225_v4  ;;  %v4163_v29 = vrot.slane %v4143_v20, 9  ;;  %v3208_v30 = vrot.slane %v4144_v27, 5 }
  0xaa   : > { %4643 = vmatprep.subr.bf16.mxu1 %v5564_v51  ;;  %4615 = vmatpush3.bf16.msra.mxu0 %v4914_v50  ;;  %v2867_v46 = vsel %vm5085_vm2, %v2862_v38, %v2866_v21  ;;  %v2895_v50 = vor.u32 %v2894_v44, %v2890_v43  ;;  %v4156_v38 = vld [vmem:[%s5062_s6 + $0x64] sm:$0xf]  ;;  %v4146_v44 = vld [vmem:[%s5062_s6 + $0x3c] sm:$0xe]  ;;  %v3246_v2 = vrot.slane %v4160_v59, 5 }
  0xab   : > { %4599 = vmatmul.mubr.bf16.gmra.mrb[8].mxu0 %v4126_v32  ;;  %4616 = vmatprep.subr.bf16.mxu0 %v5564_v51  ;;  %v4127_v57 = vcombine.low %v2867_v46, %v2877_v26  ;;  %v3223_v6 = vsel %vm5207_vm5, %v4165_v60, %v3222_v62  ;;  %v4155_v32 = vld [vmem:[%s5062_s6 + $0x60] sm:$0xe]  ;;  %v3209_v41 = vsel %vm5207_vm5, %v4163_v29, %v3208_v30  ;;  %v3210_v42 = vrot.slane %v3208_v30, 4 }
  0xac   : > { %v2896_v63 = vrot.slane %v2895_v50, 4  ;;  %v4189_v21 = vcombine.low %v3223_v6, %v3226_v18  ;;  %v4167_v40 = vrot.slane %v4155_v32, 9  ;;  %v4186_v46 = vcombine.low %v3202_v22, %v3205_v34 }
  0xad   : > { %4651 = vmatpush3.bf16.msra.mxu1 %v5564_v51  ;;  %4602 = vmatprep.mubr.bf16.mxu0 %v4127_v57  ;;  %v4164_v56 = vrot.slane %v4146_v44, 9  ;;  %v3217_v57 = vrot.slane %v3215_v1, 4  ;;  %v4168_v62 = vrot.slane %v4158_v52, 9 }
  0xae   : > { %4644 = vmatprep.subr.bf16.mxu1 %v5581_v15  ;;  %4617 = vmatpush3.bf16.msra.mxu0 %v5564_v51  ;;  %v2891_v51 = vsel %vm5085_vm2, %v2886_v58, %v2890_v43  ;;  %v2901_v0 = vsel %vm5085_vm2, %v2896_v63, %v2900_v48  ;;  %v3236_v43 = vrot.slane %v4156_v38, 5  ;;  %v3239_v48 = vrot.slane %v4157_v39, 5 }
  0xaf   : > { %4618 = vmatprep.subr.bf16.mxu0 %v5581_v15  ;;  %v4128_v16 = vcombine.low %v2891_v51, %v2901_v0  ;;  %v3218_v58 = vrot.slane %v4148_v36, 5  ;;  %v3243_v63 = vrot.slane %v4159_v54, 5  ;;  %v3216_v51 = vsel %vm5207_vm5, %v4164_v56, %v3215_v1 }
  0xb0   : > { %4475 = vmatmul.mubr.bf16.gmra.mrb[12].mxu1 %v4917_v13  ;;  %v4153_v13 = vld [vmem:[%s5062_s6 + $0x58] sm:$0xf]  ;;  %v3237_v26 = vsel %vm5207_vm5, %v4167_v40, %v3236_v43  ;;  %v3238_v50 = vrot.slane %v3236_v43, 4 }
  0xb1   : > { %4652 = vmatpush3.bf16.msra.mxu1 %v5581_v15  ;;  %v3229_v25 = vrot.slane %v4153_v13, 5  ;;  %4630 = vmatprep.mubr.bf16.mxu1 %v4189_v21  ;;  %v3244_v4 = vsel %vm5207_vm5, %v4168_v62, %v3243_v63  ;;  %v3245_v5 = vrot.slane %v3243_v63, 4  ;;  %v3219_v6 = vsel %vm5207_vm5, %v3217_v57, %v3218_v58 }
  0xb2   : > { %4645 = vmatprep.subr.bf16.mxu1 %v5592_v14  ;;  %4619 = vmatpush3.bf16.msra.mxu0 %v5581_v15  ;;  %v4145_v15 = vld [vmem:[%s5062_s6 + $0x38] sm:$0x1]  ;;  %v3240_v60 = vsel %vm5207_vm5, %v3238_v50, %v3239_v48  ;;  %v4188_v8 = vcombine.low %v3216_v51, %v3219_v6 }
  0xb3   : > { %4620 = vmatprep.subr.bf16.mxu0 %v5592_v14  ;;  %4603 = vmatmul.mubr.bf16.gmra.mrb[12].mxu0 %v4128_v16  ;;  %v3211_v31 = vrot.slane %v4145_v15, 5  ;;  %v3230_v35 = vsel %vm5207_vm5, %v4166_v33, %v3229_v25  ;;  %v3231_v37 = vrot.slane %v3229_v25, 4  ;;  %v4191_v3 = vcombine.low %v3237_v26, %v3240_v60 }
  0xb4   : > { %4622 = vmatprep.mubr.bf16.mxu0 %v4185_v17  ;;  %v3247_v53 = vsel %vm5207_vm5, %v3245_v5, %v3246_v2 }
  0xb5   : > { %4653 = vmatpush3.bf16.msra.mxu1 %v5592_v14  ;;  %v3233_v47 = vsel %vm5207_vm5, %v3231_v37, %v3232_v28  ;;  %v4192_v7 = vcombine.low %v3244_v4, %v3247_v53 }
  0xb6   : > { %4621 = vmatpush3.bf16.msra.mxu0 %v5592_v14  ;;  %v4190_v49 = vcombine.low %v3230_v35, %v3233_v47  ;;  %v3212_v14 = vsel %vm5207_vm5, %v3210_v42, %v3211_v31 }
  0xb7   : > { %v4187_v55 = vcombine.low %v3209_v41, %v3212_v14 }
  0xb8   : > { %4631 = vmatmul.mubr.bf16.vlgmr.msra.gmra.mrb[16].mxu1 %v4190_v49 }
  0xb9   : > { %4634 = vmatprep.mubr.bf16.mxu1 %v4191_v3 }
  0xbb   : > { %4623 = vmatmul.mubr.bf16.vlgmr.msra.gmra.mrb[0].mxu0 %v4186_v46 }
  0xbc   : > { %4626 = vmatprep.mubr.bf16.mxu0 %v4187_v55 }
  0xc0   : > { %4635 = vmatmul.mubr.bf16.gmra.mrb[20].mxu1 %v4192_v7 }
  0xc3   : > { %4627 = vmatmul.mubr.bf16.gmra.mrb[4].mxu0 %v4188_v8 }
 0x16b   : > { %v4464_v61 = vpop.f32.mrb[0].mxu1 }
 0x16c   : > { %v1493_v0 = vpop.f32.mrb[1].mxu1 }
 0x16d   : > { %v4465_v9 = vpop.f32.mrb[2].mxu1 }
 0x16e   : > { %v1496_v10 = vpop.f32.mrb[3].mxu1 }
 0x173   : > { %v5677_v11 = vpop.f32.mrb[4].mxu1 }
 0x174   : > { %v5679_v12 = vpop.f32.mrb[5].mxu1 }
 0x175   : > { %v5681_v24 = vpop.f32.mrb[6].mxu1 }
 0x176   : > { %v5683_v13 = vpop.f32.mrb[7].mxu1 }
 0x17b   : > { %v4472_v16 = vpop.f32.mrb[8].mxu1 }
 0x17c   : > { %v1525_v17 = vpop.f32.mrb[9].mxu1 }
 0x17d   : > { %v4473_v18 = vpop.f32.mrb[10].mxu1 }
 0x17e   : > { %v1528_v19 = vpop.f32.mrb[11].mxu1  ;;  %v4600_v21 = vpop.f32.mrb[8].mxu0 }
 0x17f   : > { %v4662_v23 = vadd.f32 %v4600_v21, %v4472_v16  ;;  %v3065_v25 = vpop.f32.mrb[9].mxu0 }
 0x180   : > { %v4664_v15 = vadd.f32 %v3065_v25, %v1525_v17  ;;  %v4601_v28 = vpop.f32.mrb[10].mxu0 }
 0x181   : > { %v4666_v29 = vadd.f32 %v4601_v28, %v4473_v18  ;;  %v3068_v30 = vpop.f32.mrb[11].mxu0 }
 0x182   : > { %v4668_v31 = vadd.f32 %v3068_v30, %v1528_v19 }
 0x183   : > { %v4476_v33 = vpop.f32.mrb[12].mxu1 }
 0x184   : > { %v1541_v20 = vpop.f32.mrb[13].mxu1 }
 0x185   : > { %v4477_v22 = vpop.f32.mrb[14].mxu1 }
 0x186   : > { %v1544_v27 = vpop.f32.mrb[15].mxu1  ;;  %v4604_v32 = vpop.f32.mrb[12].mxu0 }
 0x187   : > { %v4670_v34 = vadd.f32 %v4604_v32, %v4476_v33  ;;  %v3081_v35 = vpop.f32.mrb[13].mxu0 }
 0x188   : > { %v4672_v37 = vadd.f32 %v3081_v35, %v1541_v20  ;;  %v4605_v38 = vpop.f32.mrb[14].mxu0 }
 0x189   : > { %v4674_v39 = vadd.f32 %v4605_v38, %v4477_v22  ;;  %v3084_v40 = vpop.f32.mrb[15].mxu0 }
 0x18a   : > { %v4676_v41 = vadd.f32 %v3084_v40, %v1544_v27 }
 0x18b   : > { %v4632_v42 = vpop.f32.mrb[16].mxu1 }
 0x18c   : > { %v5692_v43 = vadd.f32 %v4662_v23, %v4632_v42  ;;  %v3411_v44 = vpop.f32.mrb[17].mxu1 }
 0x18d   : > { %v5694_v46 = vadd.f32 %v4664_v15, %v3411_v44  ;;  %v4633_v47 = vpop.f32.mrb[18].mxu1 }
 0x18e   : > { %v4624_v45 = vpop.f32.mrb[0].mxu0  ;;  %3516 = vst [vmem:[%s5690_s14 + $0x50] sm:$0xff] %v5692_v43  ;;  %v5698_v1 = vadd.f32 %v4666_v29, %v4633_v47  ;;  %v3414_v49 = vpop.f32.mrb[19].mxu1 }
 0x18f   : > { %v4654_v48 = vadd.f32 %v4624_v45, %v4464_v61  ;;  %v3379_v36 = vpop.f32.mrb[1].mxu0  ;;  %3514 = vst [vmem:[%s5690_s14 + $0x40] sm:$0xff] %v5694_v46  ;;  %v4669_v50 = vadd.f32 %v4668_v31, %v3414_v49  ;;  %v4960_v61 = vmov (!%p5673_p8), 0.0  }
 0x190   : > { %v4655_v14 = vadd.f32 %v3379_v36, %v1493_v0  ;;  %v4625_v26 = vpop.f32.mrb[2].mxu0  ;;  %3517 = vst [vmem:[%s5690_s14 + $0x58] sm:$0xff] %v5698_v1  ;;  %3528 = vst [vmem:[%s5774_s3] sm:$0x1] (!%p5673_p8), %v4960_v61 }
 0x191   : > { %3508 = vst [vmem:[%s5690_s14 + $0x10] sm:$0xff] %v4654_v48  ;;  %v4656_v52 = vadd.f32 %v4625_v26, %v4465_v9  ;;  %v3382_v54 = vpop.f32.mrb[3].mxu0  ;;  %3515 = vst [vmem:[%s5690_s14 + $0x48] sm:$0xff] %v4669_v50 }
 0x192   : > { %3506 = vst [vmem:[%s5690_s14] sm:$0xff] %v4655_v14  ;;  %v4657_v55 = vadd.f32 %v3382_v54, %v1496_v10  ;;  %3529 = vst [vmem:[%s5775_s4] sm:$0x1] (!%p5673_p8), %v4960_v61 }
 0x193   : > { %3509 = vst [vmem:[%s5690_s14 + $0x18] sm:$0xff] %v4656_v52  ;;  %v4636_v56 = vpop.f32.mrb[20].mxu1 }
 0x194   : > { %3507 = vst [vmem:[%s5690_s14 + $0x8] sm:$0xff] %v4657_v55  ;;  %v5709_v57 = vadd.f32 %v4670_v34, %v4636_v56  ;;  %v3427_v58 = vpop.f32.mrb[21].mxu1 }
 0x195   : > { %v4673_v60 = vadd.f32 %v4672_v37, %v3427_v58  ;;  %v4637_v62 = vpop.f32.mrb[22].mxu1 }
 0x196   : > { %v4628_v59 = vpop.f32.mrb[4].mxu0  ;;  %3520 = vst [vmem:[%s5690_s14 + $0x70] sm:$0xff] %v5709_v57  ;;  %v4675_v3 = vadd.f32 %v4674_v39, %v4637_v62  ;;  %v3430_v4 = vpop.f32.mrb[23].mxu1  ;;  %3527 = sbr.rel (%p5673_p8) target bundleno = 413 (0x19d), region = 32 }
 0x197   : > { %v4658_v63 = vadd.f32 %v4628_v59, %v5677_v11  ;;  %v3395_v2 = vpop.f32.mrb[5].mxu0  ;;  %3518 = vst [vmem:[%s5690_s14 + $0x60] sm:$0xff] %v4673_v60  ;;  %v4677_v6 = vadd.f32 %v4676_v41, %v3430_v4 }
 0x198   : > { %v4659_v5 = vadd.f32 %v3395_v2, %v5679_v12  ;;  %v4629_v51 = vpop.f32.mrb[6].mxu0  ;;  %3521 = vst [vmem:[%s5690_s14 + $0x78] sm:$0xff] %v4675_v3 }
 0x199   : > { %3512 = vst [vmem:[%s5690_s14 + $0x30] sm:$0xff] %v4658_v63  ;;  %v4660_v53 = vadd.f32 %v4629_v51, %v5681_v24  ;;  %v3398_v7 = vpop.f32.mrb[7].mxu0  ;;  %3519 = vst [vmem:[%s5690_s14 + $0x68] sm:$0xff] %v4677_v6 }
 0x19a   : > { %3510 = vst [vmem:[%s5690_s14 + $0x20] sm:$0xff] %v4659_v5  ;;  %v4661_v8 = vadd.f32 %v3398_v7, %v5683_v13 }
 0x19b   : > { %3513 = vst [vmem:[%s5690_s14 + $0x38] sm:$0xff] %v4660_v53 }
 0x19c   : > { %3511 = vst [vmem:[%s5690_s14 + $0x28] sm:$0xff] %v4661_v8 }
 0x19d PF: > { %v3531_v0 = vadd.f32 %v4657_v55, %v4655_v14  ;;  %v3555_v9 = vmul.f32 %v4655_v14, %v4655_v14  ;;  %v3556_v10 = vmul.f32 %v4657_v55, %v4657_v55  ;;  %v3557_v12 = vmul.f32 %v4654_v48, %v4654_v48  ;;  %v3530_v4 = vld [vmem:[%s5774_s3] sm:$0x1] }
 0x19e   : > { %v3558_v13 = vmul.f32 %v4656_v52, %v4656_v52  ;;  %v3559_v18 = vmul.f32 %v4659_v5, %v4659_v5  ;;  %v3560_v20 = vmul.f32 %v4661_v8, %v4661_v8  ;;  %v3561_v23 = vmul.f32 %v4658_v63, %v4658_v63 }
 0x19f   : > { %v3532_v11 = vadd.f32 %v4654_v48, %v3531_v0  ;;  %v3571_v16 = vadd.f32 %v3556_v10, %v3555_v9  ;;  %v3562_v15 = vmul.f32 %v4660_v53, %v4660_v53  ;;  %v3563_v30 = vmul.f32 %v5694_v46, %v5694_v46 }
 0x1a0   : > { %v3564_v34 = vmul.f32 %v4669_v50, %v4669_v50  ;;  %v3565_v38 = vmul.f32 %v5692_v43, %v5692_v43  ;;  %v3566_v41 = vmul.f32 %v5698_v1, %v5698_v1  ;;  %v3567_v45 = vmul.f32 %v4673_v60, %v4673_v60 }
 0x1a1   : > { %v3533_v24 = vadd.f32 %v4656_v52, %v3532_v11  ;;  %v3572_v19 = vadd.f32 %v3571_v16, %v3557_v12  ;;  %v3568_v48 = vmul.f32 %v4677_v6, %v4677_v6  ;;  %v3569_v14 = vmul.f32 %v5709_v57, %v5709_v57 }
 0x1a3   : > { %v3534_v17 = vadd.f32 %v4659_v5, %v3533_v24  ;;  %v3573_v21 = vadd.f32 %v3572_v19, %v3558_v13 }
 0x1a5   : > { %v3535_v33 = vadd.f32 %v4661_v8, %v3534_v17  ;;  %v3574_v25 = vadd.f32 %v3573_v21, %v3559_v18 }
 0x1a7   : > { %v3536_v22 = vadd.f32 %v4658_v63, %v3535_v33  ;;  %v3575_v28 = vadd.f32 %v3574_v25, %v3560_v20 }
 0x1a9   : > { %v3537_v27 = vadd.f32 %v4660_v53, %v3536_v22  ;;  %v3576_v31 = vadd.f32 %v3575_v28, %v3561_v23 }
 0x1ab   : > { %v3538_v29 = vadd.f32 %v5694_v46, %v3537_v27  ;;  %v3577_v35 = vadd.f32 %v3576_v31, %v3562_v15 }
 0x1ad   : > { %v3539_v32 = vadd.f32 %v4669_v50, %v3538_v29  ;;  %v3578_v39 = vadd.f32 %v3577_v35, %v3563_v30  ;;  %v3570_v50 = vmul.f32 %v4675_v3, %v4675_v3 }
 0x1af   : > { %v3540_v37 = vadd.f32 %v5692_v43, %v3539_v32  ;;  %v3579_v42 = vadd.f32 %v3578_v39, %v3564_v34 }
 0x1b1   : > { %v3541_v40 = vadd.f32 %v5698_v1, %v3540_v37  ;;  %v3580_v47 = vadd.f32 %v3579_v42, %v3565_v38 }
 0x1b3   : > { %v3542_v44 = vadd.f32 %v4673_v60, %v3541_v40  ;;  %v3581_v36 = vadd.f32 %v3580_v47, %v3566_v41 }
 0x1b5   : > { %v3543_v46 = vadd.f32 %v4677_v6, %v3542_v44  ;;  %v3582_v26 = vadd.f32 %v3581_v36, %v3567_v45 }
 0x1b7   : > { %v3544_v49 = vadd.f32 %v5709_v57, %v3543_v46  ;;  %v3583_v52 = vadd.f32 %v3582_v26, %v3568_v48 }
 0x1b9   : > { %v3545_v43 = vadd.f32 %v4675_v3, %v3544_v49  ;;  %v3584_v55 = vadd.f32 %v3583_v52, %v3569_v14  ;;  %v3554_v3 = vld [vmem:[%s5775_s4] sm:$0x1] }
 0x1bb   : > { %v3546_v54 = vrot.slane %v3545_v43, 4  ;;  %v3585_v1 = vadd.f32 %v3584_v55, %v3570_v50 }
 0x1bd   : > { %v3547_v56 = vadd.f32 %v3546_v54, %v3545_v43  ;;  %v3586_v59 = vrot.slane %v3585_v1, 4 }
 0x1bf   : > { %v3548_v58 = vrot.slane %v3547_v56, 2  ;;  %v3587_v62 = vadd.f32 %v3586_v59, %v3585_v1 }
 0x1c1   : > { %v3549_v60 = vadd.f32 %v3548_v58, %v3547_v56  ;;  %v3588_v2 = vrot.slane %v3587_v62, 2 }
 0x1c3   : > { %v3550_v63 = vrot.slane %v3549_v60, 1  ;;  %v3589_v57 = vadd.f32 %v3588_v2, %v3587_v62 }
 0x1c5   : > { %v3551_v5 = vadd.f32 %v3550_v63, %v3549_v60  ;;  %v3590_v6 = vrot.slane %v3589_v57, 1 }
 0x1c7   : > { %v3552_v51 = vadd.f32 %v3551_v5, %v3530_v4  ;;  %v3591_v53 = vadd.f32 %v3590_v6, %v3589_v57 }
 0x1c9   : > { %3553 = vst [vmem:[%s5774_s3] sm:$0x1] %v3552_v51  ;;  %v3592_v7 = vadd.f32 %v3591_v53, %v3554_v3 }
 0x1cb   : > { %3593 = vst [vmem:[%s5775_s4] sm:$0x1] %v3592_v7 }
 0x1cc PF: > { %s15_s19 = sadd.s32 1, %s4958_s19   ;;  %s5781_s15 = smov %s4950_s17 }
 0x1cd   : > { %p12_p10 = scmp.ge.s32.totalorder %s15_s19, 6   ;;  %s5782_s16 = smov %s4954_s18 }
 0x1ce   : > { %s5783_s17 = smov %s5786_s20  ;;  %s5784_s18 = smov %s5790_s21 }
 0x1cf   :  { %14 = sbr.rel (!%p12_p10) target bundleno = 3 (0x3), region = 100 }

</bundles_post_ra>
